<compile_context>
chip_gen: v5e
topology: v5e:2x2
jax: 0.10.0
libtpu: 0.0.40
codegen_flags: <defaults>
</compile_context>

<pallas_src>
import functools
import math

import jax
import jax.numpy as jnp
from jax.experimental import pallas as pl
from jax.experimental.pallas import tpu as pltpu


def _bilinear_weight_matrix(in_size: int, out_size: int, scale: float) -> jnp.ndarray:
    """Dense (out_size, in_size) 1-D bilinear interpolation matrix with PyTorch
    semantics (align_corners=False, provided scale_factor used directly)."""
    out_idx = jnp.arange(out_size, dtype=jnp.float32)
    # PyTorch: src = (dst + 0.5) / scale_factor - 0.5, clamped to >= 0.
    src = (out_idx + 0.5) / float(scale) - 0.5
    src = jnp.maximum(src, 0.0)
    low = jnp.clip(jnp.floor(src).astype(jnp.int32), 0, in_size - 1)
    high = jnp.minimum(low + 1, in_size - 1)
    frac = src - low.astype(jnp.float32)
    w_low = (1.0 - frac)[:, None] * jax.nn.one_hot(low, in_size, dtype=jnp.float32)
    w_high = frac[:, None] * jax.nn.one_hot(high, in_size, dtype=jnp.float32)
    return w_low + w_high  # (out_size, in_size)


def _upsample_kernel(x_ref, wr_ref, wct_ref, o_ref, *, precision):
    # x_ref:   (B, H_in, W_in)   plane block (reused across inner row tiles)
    # wr_ref:  (TH, H_in)        tile of the row-interpolation matrix (shared)
    # wct_ref: (W_in, W_out)     column-interpolation matrix (shared, tiny)
    # o_ref:   (B, TH, W_out)
    wr = wr_ref[...]
    wct = wct_ref[...]
    nplanes = x_ref.shape[0]
    for p in range(nplanes):  # small static unroll; minimal dense MACs per plane
        t = jnp.dot(wr, x_ref[p],
                    preferred_element_type=jnp.float32, precision=precision)
        z = jnp.dot(t.astype(wct.dtype), wct,
                    preferred_element_type=jnp.float32, precision=precision)
        o_ref[p] = z.astype(o_ref.dtype)


def _divisors(n: int):
    return [d for d in range(1, n + 1) if n % d == 0]


def _vmem_capacity_bytes() -> int:
    try:
        return int(pltpu.get_tpu_info().vmem_capacity_bytes)
    except Exception:
        return 64 * 1024 * 1024  # conservative (v7x per-TC VMEM)


def _footprint_bytes(b, th, h_in, w_in, w_out, x_bytes, w_bytes) -> int:
    return (2 * b * h_in * w_in * x_bytes          # input plane block (double-buffered)
            + 2 * th * h_in * w_bytes              # Wr tile (double-buffered)
            + 2 * w_in * w_out * w_bytes           # WcT (small; double-buffered)
            + 2 * b * th * w_out * x_bytes         # output block (double-buffered)
            + b * th * (w_in + 2 * w_out) * 4)     # in-kernel f32 intermediates (unrolled)


def _choose_tiles(nc, h_in, w_in, h_out, w_out, x_bytes, w_bytes, vmem_budget):
    """Pick (plane block b, row tile th): b | nc, th | h_out, th % 8 == 0 (or full),
    footprint fits the VMEM budget, and >=2 grid steps when possible (v7x 2 TCs)."""
    th_cands = [t for t in _divisors(h_out) if t % 8 == 0] or [h_out]
    b_cands = _divisors(nc)

    th = max(th_cands)
    b_pref = [d for d in b_cands if nc // d >= 2] or b_cands
    b = max(b_pref)
    # Keep a single input block well under the budget so double-buffering survives.
    while b > 1 and b * h_in * w_in * x_bytes > vmem_budget // 4:
        b = max(d for d in b_cands if d < b)
    # Shrink row tile first, then the plane block, until everything fits.
    while _footprint_bytes(b, th, h_in, w_in, w_out, x_bytes, w_bytes) > vmem_budget:
        smaller_th = [t for t in th_cands if t < th]
        if smaller_th:
            th = max(smaller_th)
            continue
        if b > 1:
            b = max(d for d in b_cands if d < b)
            continue
        break
    # Guarantee >=2 grid steps along a parallel axis so both v7x TCs get work.
    if nc // b == 1 and h_out // th == 1:
        multi_th = [t for t in th_cands if h_out // t >= 2]
        if multi_th:
            th = max(multi_th)
        elif nc >= 2:
            b = max(d for d in b_cands if nc // d >= 2)
    return b, th


@functools.partial(jax.jit, static_argnames=("scale_factor",))
def upsample_bilinear(x: jnp.ndarray, scale_factor) -> jnp.ndarray:
    """Equivalent of F.interpolate(x, scale_factor=scale_factor, mode='bilinear')."""
    n, c, h_in, w_in = x.shape
    # Same rounding PyTorch uses: floor(in_size * scale_factor).
    h_out = int(math.floor(h_in * float(scale_factor)))
    w_out = int(math.floor(w_in * float(scale_factor)))
    nc = n * c

    # Explicit precision policy: bf16 inputs -> bf16 MXU operands + f32 accum;
    # everything else -> exact f32 path with HIGHEST precision.
    if x.dtype == jnp.bfloat16:
        compute_dtype, precision = jnp.bfloat16, None
    else:
        compute_dtype, precision = jnp.float32, jax.lax.Precision.HIGHEST

    wr = _bilinear_weight_matrix(h_in, h_out, scale_factor).astype(compute_dtype)
    wct = _bilinear_weight_matrix(w_in, w_out, scale_factor).T.astype(compute_dtype)

    x_bytes = jnp.dtype(x.dtype).itemsize
    w_bytes = jnp.dtype(compute_dtype).itemsize
    vmem_cap = _vmem_capacity_bytes()
    vmem_budget = int(vmem_cap * 0.6)   # headroom for Mosaic internal scratch
    b, th = _choose_tiles(nc, h_in, w_in, h_out, w_out, x_bytes, w_bytes, vmem_budget)

    footprint = _footprint_bytes(b, th, h_in, w_in, w_out, x_bytes, w_bytes)
    vmem_limit = int(min(max(footprint + (16 << 20), 32 << 20), int(vmem_cap * 0.9)))

    # Free reshapes only (no transposes, no extra HBM round trips).
    x_planes = x.reshape(nc, h_in, w_in)

    # Grid: plane blocks OUTER, row tiles INNER.  The x block's index map depends
    # only on i, so it is fetched once per plane block and reused across all row
    # tiles; do not flip the axes (would re-DMA the input block every step).
    grid = (nc // b, h_out // th)

    out_planes = pl.pallas_call(
        functools.partial(_upsample_kernel, precision=precision),
        out_shape=jax.ShapeDtypeStruct((nc, h_out, w_out), x.dtype),
        grid_spec=pltpu.PrefetchScalarGridSpec(
            num_scalar_prefetch=0,
            grid=grid,
            in_specs=[
                pl.BlockSpec((b, h_in, w_in), lambda i, j: (i, 0, 0)),
                pl.BlockSpec((th, h_in), lambda i, j: (j, 0)),
                # Constant index map -> DMA'd once; small, so double-buffer waste
                # is negligible (pl.Buffered(1) not needed).
                pl.BlockSpec((w_in, w_out), lambda i, j: (0, 0)),
            ],
            out_specs=pl.BlockSpec((b, th, w_out), lambda i, j: (i, j, 0)),
        ),
        compiler_params=pltpu.CompilerParams(
            dimension_semantics=("parallel", "parallel"),
            vmem_limit_bytes=vmem_limit,
        ),
    )(x_planes, wr, wct)

    return out_planes.reshape(n, c, h_out, w_out)


if __name__ == "__main__":
    key = jax.random.PRNGKey(0)
    # Small shapes consistent with the module: NCHW input, scale_factor=2.
    x = jax.random.normal(key, (2, 4, 16, 16), dtype=jnp.float32)

    out = upsample_bilinear(x, scale_factor=2)
    out = jax.block_until_ready(out)

    assert out.shape == (2, 4, 32, 32), out.shape

    # Half-pixel bilinear in jax.image.resize matches PyTorch align_corners=False
    # for integer upscale factors.
    ref = jax.image.resize(x, (2, 4, 32, 32), method="bilinear")
    assert float(jnp.max(jnp.abs(out - ref))) < 1e-5

    print("KERNEL_OK")
</pallas_src>

<mosaic_0001>
module attributes {stable_mosaic.version = 11 : i64} {
  func.func @_upsample_kernel(%arg0: i32, %arg1: i32, %arg2: memref<4x16x16xf32, #tpu.memory_space<vmem>>, %arg3: memref<32x16xf32, #tpu.memory_space<vmem>>, %arg4: memref<16x32xf32, #tpu.memory_space<vmem>>, %arg5: memref<4x32x32xf32, #tpu.memory_space<vmem>>) attributes {dimension_semantics = [#tpu.dimension_semantics<parallel>, #tpu.dimension_semantics<parallel>], iteration_bounds = array<i64: 2, 1>, scalar_prefetch = 0 : i64, scratch_operands = 0 : i64, tpu.core_type = #tpu.core_type<tc>, window_params = [{transform_indices = @transform_0, window_bounds = array<i64: 4, 16, 16>}, {transform_indices = @transform_1, window_bounds = array<i64: 32, 16>}, {pipeline_mode = #tpu.pipeline_mode<synchronous>, transform_indices = @transform_2, window_bounds = array<i64: 16, 32>}, {transform_indices = @transform_3, window_bounds = array<i64: 4, 32, 32>}]} {
    %c0 = arith.constant 0 : index
    %c0_0 = arith.constant 0 : index
    %0 = vector.load %arg3[%c0, %c0_0] : memref<32x16xf32, #tpu.memory_space<vmem>>, vector<32x16xf32>
    %c0_1 = arith.constant 0 : index
    %c0_2 = arith.constant 0 : index
    %1 = vector.load %arg4[%c0_1, %c0_2] : memref<16x32xf32, #tpu.memory_space<vmem>>, vector<16x32xf32>
    %c0_3 = arith.constant 0 : index
    %c0_4 = arith.constant 0 : index
    %c0_5 = arith.constant 0 : index
    %2 = vector.load %arg2[%c0_3, %c0_4, %c0_5] : memref<4x16x16xf32, #tpu.memory_space<vmem>>, vector<1x16x16xf32>
    %3 = vector.shape_cast %2 : vector<1x16x16xf32> to vector<16x16xf32>
    %cst = arith.constant dense<0.000000e+00> : vector<32x16xf32>
    %4 = tpu.matmul %0, %3, %cst {dimension_numbers = #tpu.dot_dimension_numbers<[1], [0], [0], [1], [0, 0, 1, 1], [], []>, precision = #tpu.contract_precision<fp32>} : vector<32x16xf32>, vector<16x16xf32>, vector<32x16xf32> -> vector<32x16xf32>
    %cst_6 = arith.constant dense<0.000000e+00> : vector<32x32xf32>
    %5 = tpu.matmul %4, %1, %cst_6 {dimension_numbers = #tpu.dot_dimension_numbers<[1], [0], [0], [1], [0, 0, 1, 1], [], []>, precision = #tpu.contract_precision<fp32>} : vector<32x16xf32>, vector<16x32xf32>, vector<32x32xf32> -> vector<32x32xf32>
    %c0_7 = arith.constant 0 : index
    %c0_8 = arith.constant 0 : index
    %c0_9 = arith.constant 0 : index
    %6 = vector.load %arg5[%c0_7, %c0_8, %c0_9] : memref<4x32x32xf32, #tpu.memory_space<vmem>>, vector<1x32x32xf32>
    %7 = vector.shape_cast %6 : vector<1x32x32xf32> to vector<32x32xf32>
    %8 = vector.shape_cast %5 : vector<32x32xf32> to vector<1x32x32xf32>
    tpu.vector_store %arg5[%c0_7, %c0_8, %c0_9], %8 {strides = array<i32>} : memref<4x32x32xf32, #tpu.memory_space<vmem>>, vector<1x32x32xf32>,
    %c1 = arith.constant 1 : index
    %c0_10 = arith.constant 0 : index
    %c0_11 = arith.constant 0 : index
    %9 = vector.load %arg2[%c1, %c0_10, %c0_11] : memref<4x16x16xf32, #tpu.memory_space<vmem>>, vector<1x16x16xf32>
    %10 = vector.shape_cast %9 : vector<1x16x16xf32> to vector<16x16xf32>
    %cst_12 = arith.constant dense<0.000000e+00> : vector<32x16xf32>
    %11 = tpu.matmul %0, %10, %cst_12 {dimension_numbers = #tpu.dot_dimension_numbers<[1], [0], [0], [1], [0, 0, 1, 1], [], []>, precision = #tpu.contract_precision<fp32>} : vector<32x16xf32>, vector<16x16xf32>, vector<32x16xf32> -> vector<32x16xf32>
    %cst_13 = arith.constant dense<0.000000e+00> : vector<32x32xf32>
    %12 = tpu.matmul %11, %1, %cst_13 {dimension_numbers = #tpu.dot_dimension_numbers<[1], [0], [0], [1], [0, 0, 1, 1], [], []>, precision = #tpu.contract_precision<fp32>} : vector<32x16xf32>, vector<16x32xf32>, vector<32x32xf32> -> vector<32x32xf32>
    %c1_14 = arith.constant 1 : index
    %c0_15 = arith.constant 0 : index
    %c0_16 = arith.constant 0 : index
    %13 = vector.load %arg5[%c1_14, %c0_15, %c0_16] : memref<4x32x32xf32, #tpu.memory_space<vmem>>, vector<1x32x32xf32>
    %14 = vector.shape_cast %13 : vector<1x32x32xf32> to vector<32x32xf32>
    %15 = vector.shape_cast %12 : vector<32x32xf32> to vector<1x32x32xf32>
    tpu.vector_store %arg5[%c1_14, %c0_15, %c0_16], %15 {strides = array<i32>} : memref<4x32x32xf32, #tpu.memory_space<vmem>>, vector<1x32x32xf32>,
    %c2 = arith.constant 2 : index
    %c0_17 = arith.constant 0 : index
    %c0_18 = arith.constant 0 : index
    %16 = vector.load %arg2[%c2, %c0_17, %c0_18] : memref<4x16x16xf32, #tpu.memory_space<vmem>>, vector<1x16x16xf32>
    %17 = vector.shape_cast %16 : vector<1x16x16xf32> to vector<16x16xf32>
    %cst_19 = arith.constant dense<0.000000e+00> : vector<32x16xf32>
    %18 = tpu.matmul %0, %17, %cst_19 {dimension_numbers = #tpu.dot_dimension_numbers<[1], [0], [0], [1], [0, 0, 1, 1], [], []>, precision = #tpu.contract_precision<fp32>} : vector<32x16xf32>, vector<16x16xf32>, vector<32x16xf32> -> vector<32x16xf32>
    %cst_20 = arith.constant dense<0.000000e+00> : vector<32x32xf32>
    %19 = tpu.matmul %18, %1, %cst_20 {dimension_numbers = #tpu.dot_dimension_numbers<[1], [0], [0], [1], [0, 0, 1, 1], [], []>, precision = #tpu.contract_precision<fp32>} : vector<32x16xf32>, vector<16x32xf32>, vector<32x32xf32> -> vector<32x32xf32>
    %c2_21 = arith.constant 2 : index
    %c0_22 = arith.constant 0 : index
    %c0_23 = arith.constant 0 : index
    %20 = vector.load %arg5[%c2_21, %c0_22, %c0_23] : memref<4x32x32xf32, #tpu.memory_space<vmem>>, vector<1x32x32xf32>
    %21 = vector.shape_cast %20 : vector<1x32x32xf32> to vector<32x32xf32>
    %22 = vector.shape_cast %19 : vector<32x32xf32> to vector<1x32x32xf32>
    tpu.vector_store %arg5[%c2_21, %c0_22, %c0_23], %22 {strides = array<i32>} : memref<4x32x32xf32, #tpu.memory_space<vmem>>, vector<1x32x32xf32>,
    %c3 = arith.constant 3 : index
    %c0_24 = arith.constant 0 : index
    %c0_25 = arith.constant 0 : index
    %23 = vector.load %arg2[%c3, %c0_24, %c0_25] : memref<4x16x16xf32, #tpu.memory_space<vmem>>, vector<1x16x16xf32>
    %24 = vector.shape_cast %23 : vector<1x16x16xf32> to vector<16x16xf32>
    %cst_26 = arith.constant dense<0.000000e+00> : vector<32x16xf32>
    %25 = tpu.matmul %0, %24, %cst_26 {dimension_numbers = #tpu.dot_dimension_numbers<[1], [0], [0], [1], [0, 0, 1, 1], [], []>, precision = #tpu.contract_precision<fp32>} : vector<32x16xf32>, vector<16x16xf32>, vector<32x16xf32> -> vector<32x16xf32>
    %cst_27 = arith.constant dense<0.000000e+00> : vector<32x32xf32>
    %26 = tpu.matmul %25, %1, %cst_27 {dimension_numbers = #tpu.dot_dimension_numbers<[1], [0], [0], [1], [0, 0, 1, 1], [], []>, precision = #tpu.contract_precision<fp32>} : vector<32x16xf32>, vector<16x32xf32>, vector<32x32xf32> -> vector<32x32xf32>
    %c3_28 = arith.constant 3 : index
    %c0_29 = arith.constant 0 : index
    %c0_30 = arith.constant 0 : index
    %27 = vector.load %arg5[%c3_28, %c0_29, %c0_30] : memref<4x32x32xf32, #tpu.memory_space<vmem>>, vector<1x32x32xf32>
    %28 = vector.shape_cast %27 : vector<1x32x32xf32> to vector<32x32xf32>
    %29 = vector.shape_cast %26 : vector<32x32xf32> to vector<1x32x32xf32>
    tpu.vector_store %arg5[%c3_28, %c0_29, %c0_30], %29 {strides = array<i32>} : memref<4x32x32xf32, #tpu.memory_space<vmem>>, vector<1x32x32xf32>,
    return
  }
  func.func @transform_0(%arg0: i32, %arg1: i32) -> (i32, i32, i32) {
    %c0_i32 = arith.constant 0 : i32
    %c0_i32_0 = arith.constant 0 : i32
    %c0_i32_1 = arith.constant 0 : i32
    return %arg0, %c0_i32, %c0_i32_0 : i32, i32, i32
  }
  func.func @transform_1(%arg0: i32, %arg1: i32) -> (i32, i32) {
    %c0_i32 = arith.constant 0 : i32
    %c0_i32_0 = arith.constant 0 : i32
    return %arg1, %c0_i32 : i32, i32
  }
  func.func @transform_2(%arg0: i32, %arg1: i32) -> (i32, i32) {
    %c0_i32 = arith.constant 0 : i32
    %c0_i32_0 = arith.constant 0 : i32
    %c0_i32_1 = arith.constant 0 : i32
    return %c0_i32, %c0_i32_0 : i32, i32
  }
  func.func @transform_3(%arg0: i32, %arg1: i32) -> (i32, i32, i32) {
    %c0_i32 = arith.constant 0 : i32
    %c0_i32_0 = arith.constant 0 : i32
    return %arg0, %arg1, %c0_i32 : i32, i32, i32
  }
}

</mosaic_0001>

<bundles_post_ra>
// kernel: upsample_bilinear.1
= control target key start
LH: loop header
LB: loop body
LE: loop exit
PB: predicated region body
PF: predicated region fallthrough
CT: control target
= control target key end

     0   :  { %8 = vsyncpa [#allocation3], 0  ;;  %s3187_s0 = inlined_call_operand.hbm [shape: f32[8,16,16], index: 0, kind: input, shape index: {}]   ;;  %s3188_s1 = inlined_call_operand.vmem [shape: f32[32,16], index: 1, kind: input, shape index: {}]   ;;  %s3189_s2 = inlined_call_operand.vmem [shape: f32[16,32], index: 2, kind: input, shape index: {}]   ;;  %s3190_s3 = inlined_call_operand.hbm [shape: f32[8,32,32], index: 3, kind: output, shape index: {}]  }
   0x1   :  { %10 = vsyncpa [#allocation3 + $0x1], 0 }
   0x2   :  { %11 = vsyncpa [#allocation4], 0 }
   0x3   :  { %13 = vsyncpa [#allocation4 + $0x1], 0  ;;  %s2707_s12 = smov 0   ;;  %s2709_s13 = smov 0  }
   0x4   :  { %s2711_s14 = smov 0   ;;  %s2713_s15 = smov 0  }
   0x5   :  { %s2715_s16 = smov 0   ;;  %s2717_s17 = smov 0  }
   0x6 LB: > { %s2463_s18 = sadd.s32 4294967295, %s2681_s17   ;;  %s2464_s19 = sadd.s32 4294967294, %s2681_s17   ;;  %s2681_s17 = sphi %s2717_s17, %s19_s17   ;;  %s2677_s16 = sphi %s2715_s16, %s3199_s16   ;;  %s2673_s15 = sphi %s2713_s15, %s3198_s15   ;;  %s2669_s14 = sphi %s2711_s14, %s3197_s14   ;;  %s2665_s13 = sphi %s2709_s13, %s3196_s13   ;;  %s2661_s12 = sphi %s2707_s12, %s3195_s12  }
   0x7   : > { %s31_s20 = sadd.s32 1, %s2677_s16  ;;  %s38_s21 = sadd.s32 1, %s2669_s14 }
   0x8   : > { %p33_p0 = scmp.ge.s32.totalorder %s31_s20, 2  ;;  %p45_p1 = scmp.ne.s32.totalorder %s2669_s14, %s2665_s13 }
   0x9   : > { %p46_p2 = scmp.eq.s32.totalorder %s2681_s17, 0  ;;  %p51_p3 = scmp.ne.s32.totalorder %s2665_s13, %s2661_s12 }
   0xa   : > { %s3201_s20 = smov (%p33_p0, %s31_s20), 0  ;;  %p52_p5 = scmp.eq.s32.totalorder %s2463_s18, 0 }
   0xb   : > { %p2748_p4 = por %p46_p2, %p45_p1  ;;  %s35_s23 = ssub.s32 %s2677_s16, %s3201_s20 }
   0xc   : > { %p124_p6 = scmp.eq.s32.totalorder %s2463_s18, 1  ;;  %p36_p7 = scmp.eq.s32.totalorder %s35_s23, 0 }
   0xd   : > { %p2754_p8 = por %p52_p5, %p51_p3  ;;  %p130_p10 = scmp.eq.s32.totalorder %s2464_s19, 1 }
   0xe   : > { %p2758_p9 = por %p124_p6, %p45_p1  ;;  %p2467_p12 = scmp.ge.s32.totalorder %s2681_s17, 2 }
   0xf   : > { %s2763_s26 = scalar_select %p36_p7, %s2669_s14, %s38_s21  }
  0x10   : > { %p2765_p11 = por %p130_p10, %p51_p3  ;;  %p2515_p13 = scmp.lt.s32.totalorder %s2681_s17, 2 }
  0x11   : > { %s162_s28 = sand.u32 1, %s2669_s14   ;;  %s2500_s30 = sshll.u32 %s2677_s16, 6 }
  0x12   : > { %s2468_s29 = sshll.u32 %s162_s28, 6  ;;  %s172_s6 = scalar_lea.hbm %s3187_s0, %s2500_s30 }
  0x13   : > { %s166_s7 = scalar_lea.vmem [#allocation2], %s2468_s29  ;;  %s173_s9 = sshll.u32 %s172_s6, 4  ;;  %s174_s9 = int_to_ptr.hbm [resolvable:$true] %s173_s9 }
  0x14   : > { %s175_s8 = sshll.u32 %s166_s7, 4  ;;  %p2508_p0 = pnand %p2515_p13, %p2748_p4  ;;  %s176_s8 = int_to_ptr.vmem [resolvable:$true] %s175_s8 }
  0x15   : > { %p2472_p1 = scmp.ge.s32.totalorder %s2681_s17, 1  ;;  %s163_s10 = scalar_lea.sflag [#allocation3], %s162_s28 }
  0x16   : > { %s2683_s11 = smov 128   ;;  %s2684_s18 = smov 8  }
  0x17   : > { %2510 = dma.hbm_to_vmem [thread:$0]  (!%p2508_p0), %s174_s9, 1024, %s176_s8, %s163_s10, %s2683_s11, %s2683_s11, %s2684_s18  }
  0x18   : > { %p183_p2 = scmp.lt.s32.totalorder %s2681_s17, 3 }
  0x1a   : > { %p184_p3 = pnand %p2472_p1, %p183_p2 }
  0x1b   : > { %s2781_s19 = sand.u32 (!%p184_p3), 1, %s2665_s13  }
  0x1c   : > { %187 = sbr.rel (%p184_p3) target bundleno = 1061 (0x425), region = 32  ;;  %s2473_s21 = sshll.u32 (!%p184_p3), %s2781_s19, 6 }
  0x1d   : > { %s190_s23 = scalar_lea.sflag (!%p184_p3), [#allocation3], %s2781_s19  ;;  %s2785_s29 = scalar_lea.vmem (!%p184_p3), [#allocation2], %s2473_s21 }
  0x21   : > { %2652 = dma.done.wait (%p2754_p8), %s190_s23, 1024  }
  0x22   : > { %2654 = vsyncadd (%p2754_p8), %s190_s23, 4294966272  ;;  %vm239_vm0 = vcmask 130048   ;;  %v238_v0 = vld [vmem:[%s2785_s29 + $0x8] sm:$0xff]  ;;  %v237_v1 = vld [vmem:[%s2785_s29] sm:$0xff]  ;;  %s2474_s18 = sshll.u32 %s2781_s19, 7  ;;  %vm768_vm1 = vcmask 261120  }
  0x23   : > { %v231_v2 = vld [vmem:[%s3188_s1] sm:$0xff]  ;;  %v266_v3 = vand.u32 4294901760, %v238_v0  ;;  %v268_v4 = vand.u32 4294901760, %v237_v1  ;;  %v232_v6 = vld [vmem:[%s3188_s1 + $0x8] sm:$0xff]  ;;  %v233_v9 = vld [vmem:[%s3188_s1 + $0x10] sm:$0xff]  ;;  %s2984_s21 = scalar_lea.vmem [#allocation5], %s2474_s18 }
  0x24   : > { %v241_v5 = vsel %vm239_vm0, %v231_v2, 0  ;;  %v244_v8 = vsel %vm239_vm0, %v232_v6, 0  ;;  %v247_v17 = vsel %vm239_vm0, %v233_v9, 0  ;;  %v234_v27 = vld [vmem:[%s3188_s1 + $0x18] sm:$0xff]  ;;  %v236_v40 = vld [vmem:[%s3189_s2 + $0x8] sm:$0xff]  ;;  %v235_v46 = vld [vmem:[%s3189_s2] sm:$0xff] }
  0x25   : > { %v2800_v7 = vand.u32 4294901760, %v241_v5  ;;  %v318_v10 = vsub.f32 %v238_v0, %v266_v3  ;;  %267 = vmatpush.msra.mxu0 %v266_v3  ;;  %v324_v11 = vsub.f32 %v237_v1, %v268_v4  ;;  %402 = vmatpush.msra.mxu3 %v266_v3  ;;  %v2806_v12 = vand.u32 4294901760, %v244_v8  ;;  %v2476_v1 = vld [vmem:[%s2785_s29 + $0x18] sm:$0xff]  ;;  %s2502_s23 = sshll.u32 %s2673_s15, 7  ;;  %s2361_s30 = sshll.u32 %s2984_s21, 4  ;;  %s2362_s30 = int_to_ptr.vmem [resolvable:$true] %s2361_s30 }
  0x26   : > { %v2825_v23 = vand.u32 4294901760, %v247_v17  ;;  %v250_v30 = vsel %vm239_vm0, %v234_v27, 0  ;;  %v2884_v41 = vand.u32 4294901760, %v236_v40  ;;  %v2903_v47 = vand.u32 4294901760, %v235_v46  ;;  %s2360_s28 = scalar_lea.hbm %s3190_s3, %s2502_s23  ;;  %s2346_s15 = scalar_lea.sflag [#allocation4], %s2781_s19 }
  0x27   : > { %v2809_v13 = vsub.f32 %v241_v5, %v2800_v7  ;;  %362 = vmatpush.msra.mxu2 %v318_v10  ;;  %269 = vmatpush.msra.mxu0 %v268_v4  ;;  %v319_v14 = vand.u32 4294901760, %v318_v10  ;;  %v325_v15 = vand.u32 4294901760, %v324_v11  ;;  %v2812_v16 = vsub.f32 %v244_v8, %v2806_v12  ;;  %s2363_s4 = sshll.u32 %s2360_s28, 4  ;;  %s2619_s8 = scalar_lea.hbm %s3190_s3, 256  ;;  %s2364_s4 = int_to_ptr.hbm [resolvable:$true] %s2363_s4 }
  0x28   : > { %404 = vmatpush.msra.mxu3 %v268_v4  ;;  %v2836_v29 = vsub.f32 %v247_v17, %v2825_v23  ;;  %v2847_v33 = vand.u32 4294901760, %v250_v30  ;;  %v2888_v42 = vsub.f32 %v236_v40, %v2884_v41  ;;  %v2907_v48 = vsub.f32 %v235_v46, %v2903_v47  ;;  %s2613_s24 = sshra.s32 %s2364_s4, 4  ;;  %s2614_s24 = int_to_ptr.hbm [resolvable:$true] %s2613_s24 }
  0x29   : > { %v2816_v18 = vand.u32 4294901760, %v2809_v13  ;;  %365 = vmatpush.msra.mxu2 %v324_v11  ;;  %v320_v19 = vsub.f32 %v318_v10, %v319_v14  ;;  %447 = vmatpush.msrb.mxu0 %v319_v14  ;;  %v326_v20 = vsub.f32 %v324_v11, %v325_v15  ;;  %v2823_v22 = vand.u32 4294901760, %v2812_v16  ;;  %s2615_s5 = scalar_lea.hbm %s2614_s24, 128  ;;  %p2620_p7 = scmp.lt.s32.totalorder %s2614_s24, %s3190_s3 }
  0x2a   : > { %368 = vmatmul.f32.vlgmr.msra.gmra.mxu2 %v2809_v13  ;;  %v2845_v32 = vand.u32 4294901760, %v2836_v29  ;;  %v2853_v35 = vsub.f32 %v250_v30, %v2847_v33  ;;  %v2892_v43 = vand.u32 4294901760, %v2888_v42  ;;  %v2912_v50 = vand.u32 4294901760, %v2907_v48  ;;  %p2616_p4 = scmp.ne.s32.totalorder %s2614_s24, %s2615_s5  ;;  %p2621_p8 = scmp.lt.s32.totalorder %s2619_s8, %s2615_s5 }
  0x2b   : > { %v273_v21 = vsub.f32 %v2809_v13, %v2816_v18  ;;  %408 = vmatmul.f32.vlgmr.msra.gmra.mxu3 %v2816_v18  ;;  %v321_v24 = vand.u32 4294901760, %v320_v19  ;;  %v327_v25 = vand.u32 4294901760, %v326_v20  ;;  %451 = vmatpush.msrb.mxu0 %v325_v15  ;;  %v281_v28 = vsub.f32 %v2812_v16, %v2823_v22 }
  0x2c   : > { %v289_v34 = vsub.f32 %v2836_v29, %v2845_v32  ;;  %v2861_v37 = vand.u32 4294901760, %v2853_v35  ;;  %531 = vmatpush.msrb.mxu2 %v2884_v41  ;;  %v584_v44 = vsub.f32 %v2888_v42, %v2892_v43  ;;  %v590_v52 = vsub.f32 %v2907_v48, %v2912_v50  ;;  %p2617_p5 = pnand %p2616_p4, %p2758_p9  ;;  %p2622_p10 = por %p2621_p8, %p2620_p7 }
  0x2d   : > { %v2827_v26 = vand.u32 4294901760, %v273_v21  ;;  %322 = vmatpush.msra.mxu1 %v321_v24  ;;  %v2841_v31 = vand.u32 4294901760, %v281_v28 }
  0x2e   : > { %v2857_v36 = vand.u32 4294901760, %v289_v34  ;;  %v297_v38 = vsub.f32 %v2853_v35, %v2861_v37  ;;  %v2897_v45 = vand.u32 4294901760, %v584_v44  ;;  %533 = vmatpush.msrb.mxu2 %v2903_v47  ;;  %v2918_v53 = vand.u32 4294901760, %v590_v52  ;;  %v2475_v34 = vld [vmem:[%s2785_s29 + $0x10] sm:$0xff]  ;;  %p2618_p6 = pneg %p2617_p5 }
  0x2f   : > { %275 = vmatmul.f32.vlgmr.msra.gmra.mxu0 %v2827_v26  ;;  %328 = vmatpush.msra.mxu1 %v327_v25  ;;  %v792_v40 = vand.u32 4294901760, %v2475_v34 }
  0x30   : > { %330 = vmatmul.f32.vlgmr.msra.gmra.mxu1 %v2800_v7  ;;  %v2868_v39 = vand.u32 4294901760, %v297_v38  ;;  %626 = vmatpush.msra.mxu0 %v2888_v42  ;;  %p2623_p13 = pnand %p2622_p10, %p2618_p6 }
  0x31   : > { %484 = vmatpush.msrb.mxu1 %v266_v3  ;;  %586 = vmatpush.msrb.mxu3 %v2897_v45 }
  0x32   : > { %373 = vmatmul.f32.gmra.mxu2 %v2812_v16  ;;  %629 = vmatpush.msra.mxu0 %v2907_v48 }
  0x33   : > { %414 = vmatmul.f32.gmra.mxu3 %v2823_v22  ;;  %486 = vmatpush.msrb.mxu1 %v268_v4  ;;  %v2924_v4 = vand.u32 4294901760, %v2476_v1 }
  0x34   : > { %711 = vmatpush.msra.mxu2 %v2892_v43  ;;  %592 = vmatpush.msrb.mxu3 %v2918_v53 }
  0x35   : > { %666 = vmatpush.msra.mxu1 %v2884_v41  ;;  %v842_v9 = vsub.f32 %v2476_v1, %v2924_v4 }
  0x36   : > { %715 = vmatpush.msra.mxu2 %v2912_v50  ;;  %748 = vmatpush.msra.mxu3 %v2884_v41 }
  0x37   : > { %283 = vmatmul.f32.gmra.mxu0 %v2841_v31  ;;  %668 = vmatpush.msra.mxu1 %v2903_v47  ;;  %v843_v15 = vand.u32 4294901760, %v842_v9 }
  0x38   : > { %334 = vmatmul.f32.gmra.mxu1 %v2806_v12  ;;  %750 = vmatpush.msra.mxu3 %v2903_v47 }
  0x39   : > { %v844_v19 = vsub.f32 %v842_v9, %v843_v15 }
  0x3a   : > { %378 = vmatmul.f32.gmra.mxu2 %v2836_v29 }
  0x3b   : > { %420 = vmatmul.f32.gmra.mxu3 %v2845_v32  ;;  %v845_v27 = vand.u32 4294901760, %v844_v19 }
  0x3f   : > { %291 = vmatmul.f32.gmra.mxu0 %v2857_v36 }
  0x40   : > { %338 = vmatmul.f32.gmra.mxu1 %v2825_v23 }
  0x42   : > { %383 = vmatmul.f32.gmra.mxu2 %v2853_v35 }
  0x43   : > { %426 = vmatmul.f32.gmra.mxu3 %v2861_v37 }
  0x47   : > { %299 = vmatmul.f32.gmra.mxu0 %v2868_v39 }
  0x48   : > { %342 = vmatmul.f32.gmra.mxu1 %v2847_v33 }
  0x4f   : > { %453 = vmatmul.f32.vlgmr.msrb.gmra.mxu0 %v2800_v7 }
  0x50   : > { %488 = vmatmul.f32.vlgmr.msrb.gmra.mxu1 %v2800_v7  ;;  %791 = vmatpush.msrb.mxu0 %v2924_v4 }
  0x51   : > { %846 = vmatpush.msrb.mxu1 %v845_v27 }
  0x52   : > { %793 = vmatpush.msrb.mxu0 %v792_v40 }
  0x57   : > { %457 = vmatmul.f32.gmra.mxu0 %v2806_v12 }
  0x58   : > { %492 = vmatmul.f32.gmra.mxu1 %v2806_v12 }
  0x5f   : > { %461 = vmatmul.f32.gmra.mxu0 %v2825_v23 }
  0x60   : > { %496 = vmatmul.f32.gmra.mxu1 %v2825_v23 }
  0x67   : > { %465 = vmatmul.f32.gmra.mxu0 %v2847_v33 }
  0x68   : > { %500 = vmatmul.f32.gmra.mxu1 %v2847_v33 }
  0xac   : > { %v276_v49 = vpop.f32.mrf.mxu0 }
  0xad   : > { %v331_v51 = vpop.f32.mrf.mxu1  ;;  %v369_v57 = vpop.f32.mrf.mxu2 }
  0xae   : > { %v409_v59 = vpop.f32.mrf.mxu3  ;;  %v332_v60 = vadd.f32 %v331_v51, %v276_v49 }
  0xb0   : > { %v370_v63 = vadd.f32 %v369_v57, %v332_v60 }
  0xb2   : > { %v410_v2 = vadd.f32 %v409_v59, %v370_v63 }
  0xb4   : > { %v284_v54 = vpop.f32.mrf.mxu0 }
  0xb5   : > { %v335_v55 = vpop.f32.mrf.mxu1  ;;  %v374_v0 = vpop.f32.mrf.mxu2 }
  0xb6   : > { %v336_v3 = vadd.f32 %v335_v55, %v284_v54  ;;  %v415_v5 = vpop.f32.mrf.mxu3  ;;  %v848_v54 = vsub.f32 %v2475_v34, %v792_v40 }
  0xb8   : > { %v375_v11 = vadd.f32 %v374_v0, %v336_v3  ;;  %v849_v57 = vand.u32 4294901760, %v848_v54 }
  0xba   : > { %v416_v24 = vadd.f32 %v415_v5, %v375_v11  ;;  %v850_v0 = vsub.f32 %v848_v54, %v849_v57 }
  0xbc   : > { %v292_v56 = vpop.f32.mrf.mxu0 }
  0xbd   : > { %v339_v58 = vpop.f32.mrf.mxu1  ;;  %v379_v20 = vpop.f32.mrf.mxu2 }
  0xbe   : > { %v340_v25 = vadd.f32 %v339_v58, %v292_v56  ;;  %v421_v44 = vpop.f32.mrf.mxu3 }
  0xc0   : > { %v380_v51 = vadd.f32 %v379_v20, %v340_v25 }
  0xc2   : > { %v422_v60 = vadd.f32 %v421_v44, %v380_v51 }
  0xc4   : > { %v300_v61 = vpop.f32.mrf.mxu0 }
  0xc5   : > { %v343_v62 = vpop.f32.mrf.mxu1  ;;  %v384_v1 = vpop.f32.mrf.mxu2 }
  0xc6   : > { %v344_v63 = vadd.f32 %v343_v62, %v300_v61  ;;  %v427_v61 = vpop.f32.mrf.mxu3 }
  0xc8   : > { %v385_v11 = vadd.f32 %v384_v1, %v344_v63 }
  0xca   : > { %v428_v20 = vadd.f32 %v427_v61, %v385_v11 }
  0xcc   : > { %v454_v6 = vpop.f32.mrf.mxu0 }
  0xcd   : > { %v455_v8 = vadd.f32 %v454_v6, %v410_v2  ;;  %v489_v10 = vpop.f32.mrf.mxu1  ;;  %v851_v6 = vand.u32 4294901760, %v850_v0 }
  0xcf   : > { %v490_v14 = vadd.f32 %v489_v10, %v455_v8  ;;  %852 = vmatpush.msrb.mxu1 %v851_v6 }
  0xd1   : > { %v505_v17 = vsel %vm239_vm0, %v490_v14, 0 }
  0xd2   : > { %v2929_v21 = vand.u32 4294901760, %v505_v17 }
  0xd4   : > { %v535_v28 = vsub.f32 %v505_v17, %v2929_v21  ;;  %v458_v30 = vpop.f32.mrf.mxu0  ;;  %594 = vmatmul.f32.vlgmr.msrb.gmra.mxu3 %v2929_v21 }
  0xd5   : > { %v459_v38 = vadd.f32 %v458_v30, %v416_v24  ;;  %926 = vmatpush.msrb.mxu3 %v2924_v4  ;;  %v493_v46 = vpop.f32.mrf.mxu1 }
  0xd6   : > { %632 = vmatmul.f32.vlgmr.msra.gmra.mxu0 %v535_v28  ;;  %v536_v49 = vand.u32 4294901760, %v535_v28 }
  0xd7   : > { %v494_v52 = vadd.f32 %v493_v46, %v459_v38  ;;  %928 = vmatpush.msrb.mxu3 %v792_v40  ;;  %971 = vmatpush.msra.mxu0 %v843_v15 }
  0xd8   : > { %672 = vmatmul.f32.vlgmr.msra.gmra.mxu1 %v536_v49  ;;  %v537_v55 = vsub.f32 %v535_v28, %v536_v49 }
  0xd9   : > { %v508_v56 = vsel %vm239_vm0, %v494_v52, 0  ;;  %975 = vmatpush.msra.mxu0 %v849_v57  ;;  %1008 = vmatpush.msra.mxu1 %v2924_v4 }
  0xda   : > { %v2936_v58 = vand.u32 4294901760, %v508_v56  ;;  %v538_v59 = vand.u32 4294901760, %v537_v55 }
  0xdb   : > { %1010 = vmatpush.msra.mxu1 %v792_v40 }
  0xdc   : > { %v462_v2 = vpop.f32.mrf.mxu0  ;;  %539 = vmatmul.f32.vlgmr.msrb.gmra.mxu2 %v538_v59  ;;  %598 = vmatmul.f32.gmra.mxu3 %v2936_v58  ;;  %v543_v3 = vsub.f32 %v508_v56, %v2936_v58 }
  0xdd   : > { %v463_v5 = vadd.f32 %v462_v2, %v422_v60  ;;  %886 = vmatpush.msrb.mxu2 %v842_v9  ;;  %v497_v8 = vpop.f32.mrf.mxu1 }
  0xde   : > { %637 = vmatmul.f32.gmra.mxu0 %v543_v3  ;;  %v544_v10 = vand.u32 4294901760, %v543_v3 }
  0xdf   : > { %v498_v14 = vadd.f32 %v497_v8, %v463_v5  ;;  %889 = vmatpush.msrb.mxu2 %v848_v54 }
  0xe0   : > { %678 = vmatmul.f32.gmra.mxu1 %v544_v10  ;;  %v545_v62 = vsub.f32 %v543_v3, %v544_v10 }
  0xe1   : > { %v511_v15 = vsel %vm239_vm0, %v498_v14, 0 }
  0xe2   : > { %v550_v17 = vand.u32 4294901760, %v511_v15  ;;  %v546_v19 = vand.u32 4294901760, %v545_v62 }
  0xe4   : > { %v466_v24 = vpop.f32.mrf.mxu0  ;;  %547 = vmatmul.f32.gmra.mxu2 %v546_v19  ;;  %602 = vmatmul.f32.gmra.mxu3 %v550_v17  ;;  %v551_v9 = vsub.f32 %v511_v15, %v550_v17 }
  0xe5   : > { %v467_v25 = vadd.f32 %v466_v24, %v428_v20  ;;  %v501_v27 = vpop.f32.mrf.mxu1 }
  0xe6   : > { %642 = vmatmul.f32.gmra.mxu0 %v551_v9  ;;  %v552_v28 = vand.u32 4294901760, %v551_v9 }
  0xe7   : > { %v502_v30 = vadd.f32 %v501_v27, %v467_v25 }
  0xe8   : > { %684 = vmatmul.f32.gmra.mxu1 %v552_v28  ;;  %v553_v34 = vsub.f32 %v551_v9, %v552_v28 }
  0xe9   : > { %v514_v38 = vsel %vm239_vm0, %v502_v30, 0 }
  0xea   : > { %v558_v44 = vand.u32 4294901760, %v514_v38  ;;  %v554_v46 = vand.u32 4294901760, %v553_v34 }
  0xec   : > { %555 = vmatmul.f32.gmra.mxu2 %v554_v46  ;;  %606 = vmatmul.f32.gmra.mxu3 %v558_v44  ;;  %v559_v4 = vsub.f32 %v514_v38, %v558_v44 }
  0xee   : > { %647 = vmatmul.f32.gmra.mxu0 %v559_v4  ;;  %v560_v40 = vand.u32 4294901760, %v559_v4 }
  0xf0   : > { %690 = vmatmul.f32.gmra.mxu1 %v560_v40  ;;  %v561_v49 = vsub.f32 %v559_v4, %v560_v40 }
  0xf2   : > { %v562_v51 = vand.u32 4294901760, %v561_v49 }
  0xf4   : > { %563 = vmatmul.f32.gmra.mxu2 %v562_v51  ;;  %752 = vmatmul.f32.vlgmr.msra.gmra.mxu3 %v2929_v21 }
  0xf5   : > { %1110 = vmatpush.msra.mxu3 %v2897_v45 }
  0xf6   : > { %799 = vmatmul.f32.vlgmr.msrb.gmra.mxu0 %v2827_v26 }
  0xf7   : > { %1150 = vmatpush.msrb.mxu0 %v2888_v42  ;;  %1116 = vmatpush.msra.mxu3 %v2918_v53 }
  0xf8   : > { %854 = vmatmul.f32.vlgmr.msrb.gmra.mxu1 %v2800_v7 }
  0xf9   : > { %1190 = vmatpush.msrb.mxu1 %v2884_v41  ;;  %1153 = vmatpush.msrb.mxu0 %v2907_v48 }
  0xfb   : > { %1192 = vmatpush.msrb.mxu1 %v2903_v47 }
  0xfc   : > { %717 = vmatmul.f32.vlgmr.msra.gmra.mxu2 %v2929_v21  ;;  %756 = vmatmul.f32.gmra.mxu3 %v2936_v58 }
  0xfd   : > { %1055 = vmatpush.msra.mxu2 %v2884_v41 }
  0xfe   : > { %807 = vmatmul.f32.gmra.mxu0 %v2841_v31 }
  0xff   : > { %1057 = vmatpush.msra.mxu2 %v2903_v47 }
 0x100   : > { %858 = vmatmul.f32.gmra.mxu1 %v2806_v12 }
 0x104   : > { %721 = vmatmul.f32.gmra.mxu2 %v2936_v58  ;;  %760 = vmatmul.f32.gmra.mxu3 %v550_v17 }
 0x106   : > { %815 = vmatmul.f32.gmra.mxu0 %v2857_v36 }
 0x108   : > { %862 = vmatmul.f32.gmra.mxu1 %v2825_v23 }
 0x10c   : > { %725 = vmatmul.f32.gmra.mxu2 %v550_v17  ;;  %764 = vmatmul.f32.gmra.mxu3 %v558_v44 }
 0x10e   : > { %823 = vmatmul.f32.gmra.mxu0 %v2868_v39 }
 0x110   : > { %866 = vmatmul.f32.gmra.mxu1 %v2847_v33 }
 0x114   : > { %729 = vmatmul.f32.gmra.mxu2 %v558_v44  ;;  %932 = vmatmul.f32.vlgmr.msrb.gmra.mxu3 %v2816_v18 }
 0x115   : > { %1272 = vmatpush.msrb.mxu3 %v2884_v41 }
 0x116   : > { %977 = vmatmul.f32.vlgmr.msra.gmra.mxu0 %v2800_v7 }
 0x117   : > { %1274 = vmatpush.msrb.mxu3 %v2903_v47 }
 0x118   : > { %1012 = vmatmul.f32.vlgmr.msra.gmra.mxu1 %v2800_v7 }
 0x11c   : > { %892 = vmatmul.f32.vlgmr.msrb.gmra.mxu2 %v2809_v13  ;;  %938 = vmatmul.f32.gmra.mxu3 %v2823_v22 }
 0x11d   : > { %1235 = vmatpush.msrb.mxu2 %v2892_v43 }
 0x11e   : > { %981 = vmatmul.f32.gmra.mxu0 %v2806_v12 }
 0x11f   : > { %1239 = vmatpush.msrb.mxu2 %v2912_v50 }
 0x120   : > { %1016 = vmatmul.f32.gmra.mxu1 %v2806_v12 }
 0x124   : > { %897 = vmatmul.f32.gmra.mxu2 %v2812_v16  ;;  %944 = vmatmul.f32.gmra.mxu3 %v2845_v32 }
 0x126   : > { %985 = vmatmul.f32.gmra.mxu0 %v2825_v23 }
 0x128   : > { %1020 = vmatmul.f32.gmra.mxu1 %v2825_v23 }
 0x12c   : > { %902 = vmatmul.f32.gmra.mxu2 %v2836_v29  ;;  %950 = vmatmul.f32.gmra.mxu3 %v2861_v37 }
 0x12e   : > { %989 = vmatmul.f32.gmra.mxu0 %v2847_v33 }
 0x130   : > { %1024 = vmatmul.f32.gmra.mxu1 %v2847_v33 }
 0x134   : > { %907 = vmatmul.f32.gmra.mxu2 %v2853_v35 }
 0x153   : > { %v633_v21 = vpop.f32.mrf.mxu0 }
 0x155   : > { %v673_v52 = vpop.f32.mrf.mxu1 }
 0x157   : > { %v595_v54 = vpop.f32.mrf.mxu3 }
 0x15b   : > { %v638_v55 = vpop.f32.mrf.mxu0 }
 0x15d   : > { %v679_v56 = vpop.f32.mrf.mxu1 }
 0x15f   : > { %v540_v57 = vpop.f32.mrf.mxu2  ;;  %v599_v58 = vpop.f32.mrf.mxu3 }
 0x160   : > { %v596_v8 = vadd.f32 %v595_v54, %v540_v57 }
 0x162   : > { %v634_v61 = vadd.f32 %v633_v21, %v596_v8 }
 0x163   : > { %v643_v59 = vpop.f32.mrf.mxu0 }
 0x164   : > { %v674_v17 = vadd.f32 %v673_v52, %v634_v61 }
 0x165   : > { %v685_v60 = vpop.f32.mrf.mxu1 }
 0x167   : > { %v548_v63 = vpop.f32.mrf.mxu2  ;;  %v603_v0 = vpop.f32.mrf.mxu3 }
 0x168   : > { %v600_v15 = vadd.f32 %v599_v58, %v548_v63 }
 0x16a   : > { %v639_v25 = vadd.f32 %v638_v55, %v600_v15 }
 0x16b   : > { %v648_v1 = vpop.f32.mrf.mxu0 }
 0x16c   : > { %v680_v30 = vadd.f32 %v679_v56, %v639_v25 }
 0x16d   : > { %v691_v2 = vpop.f32.mrf.mxu1 }
 0x16f   : > { %v556_v3 = vpop.f32.mrf.mxu2  ;;  %v607_v5 = vpop.f32.mrf.mxu3 }
 0x170   : > { %v604_v28 = vadd.f32 %v603_v0, %v556_v3 }
 0x172   : > { %v644_v4 = vadd.f32 %v643_v59, %v604_v28 }
 0x173   : > { %v800_v6 = vpop.f32.mrf.mxu0 }
 0x174   : > { %v686_v21 = vadd.f32 %v685_v60, %v644_v4 }
 0x175   : > { %v855_v10 = vpop.f32.mrf.mxu1 }
 0x177   : > { %v564_v11 = vpop.f32.mrf.mxu2  ;;  %v753_v14 = vpop.f32.mrf.mxu3 }
 0x178   : > { %v608_v51 = vadd.f32 %v607_v5, %v564_v11  ;;  %v856_v11 = vadd.f32 %v855_v10, %v800_v6 }
 0x17a   : > { %v649_v56 = vadd.f32 %v648_v1, %v608_v51 }
 0x17b   : > { %v808_v62 = vpop.f32.mrf.mxu0 }
 0x17c   : > { %v692_v59 = vadd.f32 %v691_v2, %v649_v56 }
 0x17d   : > { %v859_v9 = vpop.f32.mrf.mxu1 }
 0x17f   : > { %v718_v19 = vpop.f32.mrf.mxu2  ;;  %v757_v20 = vpop.f32.mrf.mxu3 }
 0x180   : > { %v719_v24 = vadd.f32 %v718_v19, %v674_v17  ;;  %v2482_v17 = vld [vmem:[%s2785_s29 + $0x28] sm:$0xff] }
 0x181   : > { %v2999_v1 = vand.u32 4294901760, %v2482_v17 }
 0x182   : > { %v754_v27 = vadd.f32 %v753_v14, %v719_v24 }
 0x183   : > { %v816_v34 = vpop.f32.mrf.mxu0  ;;  %1315 = vmatpush.msra.mxu0 %v2999_v1  ;;  %v1366_v2 = vsub.f32 %v2482_v17, %v2999_v1 }
 0x184   : > { %769 = vst.msk [vmem:[%s2984_s21] sm:$0xff] %vm768_vm1, %v754_v27  ;;  %v860_v27 = vadd.f32 %v859_v9, %v808_v62 }
 0x185   : > { %v863_v49 = vpop.f32.mrf.mxu1 }
 0x186   : > { %v864_v56 = vadd.f32 %v863_v49, %v816_v34 }
 0x187   : > { %v722_v38 = vpop.f32.mrf.mxu2  ;;  %v761_v44 = vpop.f32.mrf.mxu3 }
 0x188   : > { %v723_v46 = vadd.f32 %v722_v38, %v680_v30  ;;  %v1367_v30 = vand.u32 4294901760, %v1366_v2 }
 0x18a   : > { %v758_v40 = vadd.f32 %v757_v20, %v723_v46  ;;  %v1368_v46 = vsub.f32 %v1366_v2, %v1367_v30 }
 0x18b   : > { %v2990_v57 = vpop.f32.mrf.mxu0 }
 0x18c   : > { %770 = vst.msk [vmem:[%s2984_s21 + $0x8] sm:$0xff] %vm768_vm1, %v758_v40  ;;  %v1369_v51 = vand.u32 4294901760, %v1368_v46 }
 0x18d   : > { %v2994_v63 = vpop.f32.mrf.mxu1 }
 0x18e   : > { %1370 = vmatpush.msra.mxu1 %v1369_v51 }
 0x18f   : > { %v726_v52 = vpop.f32.mrf.mxu2  ;;  %v765_v55 = vpop.f32.mrf.mxu3 }
 0x190   : > { %v727_v54 = vadd.f32 %v726_v52, %v686_v21  ;;  %v2481_v52 = vld [vmem:[%s2785_s29 + $0x20] sm:$0xff] }
 0x191   : > { %v1316_v62 = vand.u32 4294901760, %v2481_v52 }
 0x192   : > { %v762_v58 = vadd.f32 %v761_v44, %v727_v54 }
 0x193   : > { %v978_v5 = vpop.f32.mrf.mxu0  ;;  %1317 = vmatpush.msra.mxu0 %v1316_v62 }
 0x194   : > { %771 = vst.msk [vmem:[%s2984_s21 + $0x10] sm:$0xff] %vm768_vm1, %v762_v58 }
 0x195   : > { %v1013_v60 = vpop.f32.mrf.mxu1 }
 0x197   : > { %v730_v0 = vpop.f32.mrf.mxu2  ;;  %v933_v8 = vpop.f32.mrf.mxu3 }
 0x198   : > { %v731_v3 = vadd.f32 %v730_v0, %v692_v59  ;;  %v1372_v59 = vsub.f32 %v2481_v52, %v1316_v62 }
 0x19a   : > { %v766_v14 = vadd.f32 %v765_v55, %v731_v3 }
 0x19b   : > { %v982_v25 = vpop.f32.mrf.mxu0 }
 0x19c   : > { %772 = vst.msk [vmem:[%s2984_s21 + $0x18] sm:$0xff] %vm768_vm1, %v766_v14 }
 0x19d   : > { %v1017_v44 = vpop.f32.mrf.mxu1 }
 0x19f   : > { %v893_v61 = vpop.f32.mrf.mxu2  ;;  %v939_v20 = vpop.f32.mrf.mxu3 }
 0x1a0   : > { %v894_v15 = vadd.f32 %v893_v61, %v856_v11 }
 0x1a2   : > { %v934_v19 = vadd.f32 %v933_v8, %v894_v15 }
 0x1a3   : > { %v986_v3 = vpop.f32.mrf.mxu0 }
 0x1a4   : > { %v979_v24 = vadd.f32 %v978_v5, %v934_v19 }
 0x1a5   : > { %v1021_v15 = vpop.f32.mrf.mxu1 }
 0x1a6   : > { %v1014_v28 = vadd.f32 %v1013_v60, %v979_v24  ;;  %v1373_v60 = vand.u32 4294901760, %v1372_v59 }
 0x1a7   : > { %v898_v38 = vpop.f32.mrf.mxu2  ;;  %v945_v55 = vpop.f32.mrf.mxu3 }
 0x1a8   : > { %v1029_v6 = vsel %vm239_vm0, %v1014_v28, 0  ;;  %v899_v10 = vadd.f32 %v898_v38, %v860_v27  ;;  %v1374_v19 = vsub.f32 %v1372_v59, %v1373_v60 }
 0x1a9   : > { %v3004_v4 = vand.u32 4294901760, %v1029_v6 }
 0x1aa   : > { %v940_v40 = vadd.f32 %v939_v20, %v899_v10  ;;  %v1375_v20 = vand.u32 4294901760, %v1374_v19 }
 0x1ab   : > { %v1059_v21 = vsub.f32 %v1029_v6, %v3004_v4  ;;  %1118 = vmatmul.f32.vlgmr.msra.gmra.mxu3 %v3004_v4  ;;  %v990_v46 = vpop.f32.mrf.mxu0 }
 0x1ac   : > { %v983_v54 = vadd.f32 %v982_v25, %v940_v40  ;;  %1450 = vmatpush.msra.mxu3 %v2999_v1  ;;  %v868_v25 = vadd.f32 %v2994_v63, %v2990_v57  ;;  %1376 = vmatpush.msra.mxu1 %v1375_v20 }
 0x1ad   : > { %1156 = vmatmul.f32.vlgmr.msrb.gmra.mxu0 %v1059_v21  ;;  %v1060_v9 = vand.u32 4294901760, %v1059_v21  ;;  %v1025_v57 = vpop.f32.mrf.mxu1 }
 0x1ae   : > { %v1018_v58 = vadd.f32 %v1017_v44, %v983_v54  ;;  %1452 = vmatpush.msra.mxu3 %v1316_v62  ;;  %1495 = vmatpush.msrb.mxu0 %v1367_v30 }
 0x1af   : > { %v903_v0 = vpop.f32.mrf.mxu2  ;;  %1196 = vmatmul.f32.vlgmr.msrb.gmra.mxu1 %v1060_v9  ;;  %v1061_v8 = vsub.f32 %v1059_v21, %v1060_v9  ;;  %v951_v30 = vpop.f32.mrf.mxu3 }
 0x1b0   : > { %v1032_v14 = vsel %vm239_vm0, %v1018_v58, 0  ;;  %v904_v5 = vadd.f32 %v903_v0, %v864_v56  ;;  %1499 = vmatpush.msrb.mxu0 %v1373_v60  ;;  %1532 = vmatpush.msrb.mxu1 %v2999_v1 }
 0x1b1   : > { %v3011_v11 = vand.u32 4294901760, %v1032_v14  ;;  %v1062_v61 = vand.u32 4294901760, %v1061_v8 }
 0x1b2   : > { %v946_v17 = vadd.f32 %v945_v55, %v904_v5  ;;  %1534 = vmatpush.msrb.mxu1 %v1316_v62 }
 0x1b3   : > { %1063 = vmatmul.f32.vlgmr.msra.gmra.mxu2 %v1062_v61  ;;  %1122 = vmatmul.f32.gmra.mxu3 %v3011_v11  ;;  %v1067_v34 = vsub.f32 %v1032_v14, %v3011_v11 }
 0x1b4   : > { %v987_v49 = vadd.f32 %v986_v3, %v946_v17  ;;  %1410 = vmatpush.msra.mxu2 %v1366_v2 }
 0x1b5   : > { %1161 = vmatmul.f32.gmra.mxu0 %v1067_v34  ;;  %v1068_v24 = vand.u32 4294901760, %v1067_v34 }
 0x1b6   : > { %v1022_v27 = vadd.f32 %v1021_v15, %v987_v49  ;;  %1413 = vmatpush.msra.mxu2 %v1372_v59 }
 0x1b7   : > { %v908_v28 = vpop.f32.mrf.mxu2  ;;  %1202 = vmatmul.f32.gmra.mxu1 %v1068_v24  ;;  %v1069_v38 = vsub.f32 %v1067_v34, %v1068_v24 }
 0x1b8   : > { %v1035_v44 = vsel %vm239_vm0, %v1022_v27, 0  ;;  %v909_v6 = vadd.f32 %v908_v28, %v868_v25 }
 0x1b9   : > { %v1074_v10 = vand.u32 4294901760, %v1035_v44  ;;  %v1070_v2 = vand.u32 4294901760, %v1069_v38 }
 0x1ba   : > { %v952_v40 = vadd.f32 %v951_v30, %v909_v6 }
 0x1bb   : > { %1071 = vmatmul.f32.gmra.mxu2 %v1070_v2  ;;  %1126 = vmatmul.f32.gmra.mxu3 %v1074_v10  ;;  %v1075_v63 = vsub.f32 %v1035_v44, %v1074_v10 }
 0x1bc   : > { %v991_v51 = vadd.f32 %v990_v46, %v952_v40 }
 0x1bd   : > { %1166 = vmatmul.f32.gmra.mxu0 %v1075_v63  ;;  %v1076_v21 = vand.u32 4294901760, %v1075_v63 }
 0x1be   : > { %v1026_v52 = vadd.f32 %v1025_v57, %v991_v51 }
 0x1bf   : > { %1208 = vmatmul.f32.gmra.mxu1 %v1076_v21  ;;  %v1077_v54 = vsub.f32 %v1075_v63, %v1076_v21 }
 0x1c0   : > { %v1038_v9 = vsel %vm239_vm0, %v1026_v52, 0 }
 0x1c1   : > { %v1082_v55 = vand.u32 4294901760, %v1038_v9  ;;  %v1078_v56 = vand.u32 4294901760, %v1077_v54 }
 0x1c3   : > { %1079 = vmatmul.f32.gmra.mxu2 %v1078_v56  ;;  %1130 = vmatmul.f32.gmra.mxu3 %v1082_v55  ;;  %v1083_v1 = vsub.f32 %v1038_v9, %v1082_v55 }
 0x1c5   : > { %1171 = vmatmul.f32.gmra.mxu0 %v1083_v1  ;;  %v1084_v58 = vand.u32 4294901760, %v1083_v1 }
 0x1c7   : > { %1214 = vmatmul.f32.gmra.mxu1 %v1084_v58  ;;  %v1085_v62 = vsub.f32 %v1083_v1, %v1084_v58 }
 0x1c9   : > { %v1086_v59 = vand.u32 4294901760, %v1085_v62 }
 0x1cb   : > { %1087 = vmatmul.f32.gmra.mxu2 %v1086_v59  ;;  %1276 = vmatmul.f32.vlgmr.msrb.gmra.mxu3 %v3004_v4 }
 0x1cc   : > { %1634 = vmatpush.msrb.mxu3 %v2897_v45 }
 0x1cd   : > { %1323 = vmatmul.f32.vlgmr.msra.gmra.mxu0 %v2827_v26 }
 0x1ce   : > { %1674 = vmatpush.msra.mxu0 %v2888_v42  ;;  %1640 = vmatpush.msrb.mxu3 %v2918_v53 }
 0x1cf   : > { %1378 = vmatmul.f32.vlgmr.msra.gmra.mxu1 %v2800_v7 }
 0x1d0   : > { %1714 = vmatpush.msra.mxu1 %v2884_v41  ;;  %1677 = vmatpush.msra.mxu0 %v2907_v48 }
 0x1d2   : > { %1716 = vmatpush.msra.mxu1 %v2903_v47 }
 0x1d3   : > { %1241 = vmatmul.f32.vlgmr.msrb.gmra.mxu2 %v3004_v4  ;;  %1280 = vmatmul.f32.gmra.mxu3 %v3011_v11 }
 0x1d4   : > { %1579 = vmatpush.msrb.mxu2 %v2884_v41 }
 0x1d5   : > { %1331 = vmatmul.f32.gmra.mxu0 %v2841_v31 }
 0x1d6   : > { %1581 = vmatpush.msrb.mxu2 %v2903_v47 }
 0x1d7   : > { %1382 = vmatmul.f32.gmra.mxu1 %v2806_v12 }
 0x1db   : > { %1245 = vmatmul.f32.gmra.mxu2 %v3011_v11  ;;  %1284 = vmatmul.f32.gmra.mxu3 %v1074_v10 }
 0x1dd   : > { %1339 = vmatmul.f32.gmra.mxu0 %v2857_v36 }
 0x1df   : > { %1386 = vmatmul.f32.gmra.mxu1 %v2825_v23 }
 0x1e3   : > { %1249 = vmatmul.f32.gmra.mxu2 %v1074_v10  ;;  %1288 = vmatmul.f32.gmra.mxu3 %v1082_v55 }
 0x1e5   : > { %1347 = vmatmul.f32.gmra.mxu0 %v2868_v39 }
 0x1e7   : > { %1390 = vmatmul.f32.gmra.mxu1 %v2847_v33 }
 0x1eb   : > { %1253 = vmatmul.f32.gmra.mxu2 %v1082_v55  ;;  %1456 = vmatmul.f32.vlgmr.msra.gmra.mxu3 %v2816_v18 }
 0x1ec   : > { %1796 = vmatpush.msra.mxu3 %v2884_v41 }
 0x1ed   : > { %1501 = vmatmul.f32.vlgmr.msrb.gmra.mxu0 %v2800_v7 }
 0x1ee   : > { %1798 = vmatpush.msra.mxu3 %v2903_v47 }
 0x1ef   : > { %1536 = vmatmul.f32.vlgmr.msrb.gmra.mxu1 %v2800_v7 }
 0x1f3   : > { %1416 = vmatmul.f32.vlgmr.msra.gmra.mxu2 %v2809_v13  ;;  %1462 = vmatmul.f32.gmra.mxu3 %v2823_v22 }
 0x1f4   : > { %1759 = vmatpush.msra.mxu2 %v2892_v43 }
 0x1f5   : > { %1505 = vmatmul.f32.gmra.mxu0 %v2806_v12 }
 0x1f6   : > { %1763 = vmatpush.msra.mxu2 %v2912_v50 }
 0x1f7   : > { %1540 = vmatmul.f32.gmra.mxu1 %v2806_v12 }
 0x1fb   : > { %1421 = vmatmul.f32.gmra.mxu2 %v2812_v16  ;;  %1468 = vmatmul.f32.gmra.mxu3 %v2845_v32 }
 0x1fd   : > { %1509 = vmatmul.f32.gmra.mxu0 %v2825_v23 }
 0x1ff   : > { %1544 = vmatmul.f32.gmra.mxu1 %v2825_v23 }
 0x203   : > { %1426 = vmatmul.f32.gmra.mxu2 %v2836_v29  ;;  %1474 = vmatmul.f32.gmra.mxu3 %v2861_v37 }
 0x205   : > { %1513 = vmatmul.f32.gmra.mxu0 %v2847_v33 }
 0x207   : > { %1548 = vmatmul.f32.gmra.mxu1 %v2847_v33 }
 0x20b   : > { %1431 = vmatmul.f32.gmra.mxu2 %v2853_v35 }
 0x22a   : > { %v1157_v4 = vpop.f32.mrf.mxu0 }
 0x22c   : > { %v1197_v0 = vpop.f32.mrf.mxu1 }
 0x22e   : > { %v1119_v3 = vpop.f32.mrf.mxu3 }
 0x232   : > { %v1162_v8 = vpop.f32.mrf.mxu0 }
 0x234   : > { %v1203_v14 = vpop.f32.mrf.mxu1 }
 0x236   : > { %v1064_v5 = vpop.f32.mrf.mxu2  ;;  %v1123_v60 = vpop.f32.mrf.mxu3 }
 0x237   : > { %v1120_v25 = vadd.f32 %v1119_v3, %v1064_v5 }
 0x239   : > { %v1158_v38 = vadd.f32 %v1157_v4, %v1120_v25 }
 0x23a   : > { %v1167_v11 = vpop.f32.mrf.mxu0 }
 0x23b   : > { %v1198_v10 = vadd.f32 %v1197_v0, %v1158_v38 }
 0x23c   : > { %v1209_v61 = vpop.f32.mrf.mxu1 }
 0x23e   : > { %v1072_v15 = vpop.f32.mrf.mxu2  ;;  %v1127_v17 = vpop.f32.mrf.mxu3 }
 0x23f   : > { %v1124_v6 = vadd.f32 %v1123_v60, %v1072_v15 }
 0x241   : > { %v1163_v63 = vadd.f32 %v1162_v8, %v1124_v6 }
 0x242   : > { %v1172_v19 = vpop.f32.mrf.mxu0 }
 0x243   : > { %v1204_v52 = vadd.f32 %v1203_v14, %v1163_v63 }
 0x244   : > { %v1215_v34 = vpop.f32.mrf.mxu1 }
 0x246   : > { %v1080_v49 = vpop.f32.mrf.mxu2  ;;  %v1131_v20 = vpop.f32.mrf.mxu3 }
 0x247   : > { %v1128_v21 = vadd.f32 %v1127_v17, %v1080_v49 }
 0x249   : > { %v1168_v1 = vadd.f32 %v1167_v11, %v1128_v21 }
 0x24a   : > { %v1324_v24 = vpop.f32.mrf.mxu0 }
 0x24b   : > { %v1210_v4 = vadd.f32 %v1209_v61, %v1168_v1 }
 0x24c   : > { %v1379_v27 = vpop.f32.mrf.mxu1 }
 0x24e   : > { %v1088_v28 = vpop.f32.mrf.mxu2  ;;  %v1277_v30 = vpop.f32.mrf.mxu3 }
 0x24f   : > { %v1132_v59 = vadd.f32 %v1131_v20, %v1088_v28  ;;  %v1380_v28 = vadd.f32 %v1379_v27, %v1324_v24 }
 0x251   : > { %v1173_v60 = vadd.f32 %v1172_v19, %v1132_v59 }
 0x252   : > { %v1332_v44 = vpop.f32.mrf.mxu0 }
 0x253   : > { %v1216_v11 = vadd.f32 %v1215_v34, %v1173_v60 }
 0x254   : > { %v1383_v57 = vpop.f32.mrf.mxu1 }
 0x256   : > { %v1242_v46 = vpop.f32.mrf.mxu2  ;;  %v1281_v2 = vpop.f32.mrf.mxu3 }
 0x257   : > { %v1243_v40 = vadd.f32 %v1242_v46, %v1198_v10  ;;  %v2488_v46 = vld [vmem:[%s2785_s29 + $0x38] sm:$0xff] }
 0x259   : > { %v1278_v51 = vadd.f32 %v1277_v30, %v1243_v40  ;;  %v1838_v40 = vand.u32 4294901760, %v2488_v46 }
 0x25a   : > { %v1340_v54 = vpop.f32.mrf.mxu0 }
 0x25b   : > { %2477 = vst.msk [vmem:[%s2984_s21 + $0x20] sm:$0xff] %vm768_vm1, %v1278_v51  ;;  %v1384_v51 = vadd.f32 %v1383_v57, %v1332_v44  ;;  %1839 = vmatpush.msrb.mxu0 %v1838_v40  ;;  %v1890_v21 = vsub.f32 %v2488_v46, %v1838_v40 }
 0x25c   : > { %v1387_v62 = vpop.f32.mrf.mxu1 }
 0x25d   : > { %v1891_v1 = vand.u32 4294901760, %v1890_v21  ;;  %v1388_v60 = vadd.f32 %v1387_v62, %v1340_v54 }
 0x25e   : > { %v1246_v9 = vpop.f32.mrf.mxu2  ;;  %v1285_v55 = vpop.f32.mrf.mxu3 }
 0x25f   : > { %v1247_v56 = vadd.f32 %v1246_v9, %v1204_v52 }
 0x261   : > { %v1282_v58 = vadd.f32 %v1281_v2, %v1247_v56 }
 0x262   : > { %v3064_v5 = vpop.f32.mrf.mxu0 }
 0x263   : > { %2478 = vst.msk [vmem:[%s2984_s21 + $0x28] sm:$0xff] %vm768_vm1, %v1282_v58  ;;  %v1892_v58 = vsub.f32 %v1890_v21, %v1891_v1 }
 0x264   : > { %v3068_v15 = vpop.f32.mrf.mxu1 }
 0x265   : > { %v1893_v44 = vand.u32 4294901760, %v1892_v58 }
 0x266   : > { %v1250_v0 = vpop.f32.mrf.mxu2  ;;  %v1289_v8 = vpop.f32.mrf.mxu3 }
 0x267   : > { %v1251_v3 = vadd.f32 %v1250_v0, %v1210_v4  ;;  %v2487_v4 = vld [vmem:[%s2785_s29 + $0x30] sm:$0xff]  ;;  %1894 = vmatpush.msrb.mxu1 %v1893_v44 }
 0x268   : > { %v1840_v57 = vand.u32 4294901760, %v2487_v4 }
 0x269   : > { %v1286_v14 = vadd.f32 %v1285_v55, %v1251_v3 }
 0x26a   : > { %v1502_v20 = vpop.f32.mrf.mxu0  ;;  %1841 = vmatpush.msrb.mxu0 %v1840_v57 }
 0x26b   : > { %2479 = vst.msk [vmem:[%s2984_s21 + $0x30] sm:$0xff] %vm768_vm1, %v1286_v14 }
 0x26c   : > { %v1537_v61 = vpop.f32.mrf.mxu1 }
 0x26e   : > { %v1254_v17 = vpop.f32.mrf.mxu2  ;;  %v1457_v25 = vpop.f32.mrf.mxu3 }
 0x26f   : > { %v1255_v49 = vadd.f32 %v1254_v17, %v1216_v11  ;;  %v1896_v11 = vsub.f32 %v2487_v4, %v1840_v57 }
 0x271   : > { %v1290_v30 = vadd.f32 %v1289_v8, %v1255_v49 }
 0x272   : > { %v1506_v63 = vpop.f32.mrf.mxu0 }
 0x273   : > { %2480 = vst.msk [vmem:[%s2984_s21 + $0x38] sm:$0xff] %vm768_vm1, %v1290_v30 }
 0x274   : > { %v1541_v9 = vpop.f32.mrf.mxu1 }
 0x276   : > { %v1417_v38 = vpop.f32.mrf.mxu2  ;;  %v1463_v19 = vpop.f32.mrf.mxu3 }
 0x277   : > { %v1418_v6 = vadd.f32 %v1417_v38, %v1380_v28 }
 0x279   : > { %v1458_v10 = vadd.f32 %v1457_v25, %v1418_v6 }
 0x27a   : > { %v1510_v25 = vpop.f32.mrf.mxu0 }
 0x27b   : > { %v1503_v2 = vadd.f32 %v1502_v20, %v1458_v10 }
 0x27c   : > { %v1545_v6 = vpop.f32.mrf.mxu1 }
 0x27d   : > { %v1538_v34 = vadd.f32 %v1537_v61, %v1503_v2  ;;  %v1897_v61 = vand.u32 4294901760, %v1896_v11 }
 0x27e   : > { %v1422_v52 = vpop.f32.mrf.mxu2  ;;  %v1469_v8 = vpop.f32.mrf.mxu3 }
 0x27f   : > { %v1553_v55 = vsel %vm239_vm0, %v1538_v34, 0  ;;  %v1423_v56 = vadd.f32 %v1422_v52, %v1384_v51  ;;  %v1898_v54 = vsub.f32 %v1896_v11, %v1897_v61 }
 0x280   : > { %v3074_v24 = vand.u32 4294901760, %v1553_v55 }
 0x281   : > { %v1464_v27 = vadd.f32 %v1463_v19, %v1423_v56  ;;  %v1899_v46 = vand.u32 4294901760, %v1898_v54 }
 0x282   : > { %v1583_v59 = vsub.f32 %v1553_v55, %v3074_v24  ;;  %1642 = vmatmul.f32.vlgmr.msrb.gmra.mxu3 %v3074_v24 }
 0x283   : > { %v1507_v0 = vadd.f32 %v1506_v63, %v1464_v27  ;;  %1974 = vmatpush.msrb.mxu3 %v1838_v40  ;;  %v1392_v63 = vadd.f32 %v3068_v15, %v3064_v5  ;;  %1900 = vmatpush.msrb.mxu1 %v1899_v46  ;;  %v1514_v27 = vpop.f32.mrf.mxu0 }
 0x284   : > { %v1584_v3 = vand.u32 4294901760, %v1583_v59  ;;  %1680 = vmatmul.f32.vlgmr.msra.gmra.mxu0 %v1583_v59  ;;  %v1549_v5 = vpop.f32.mrf.mxu1 }
 0x285   : > { %v1542_v14 = vadd.f32 %v1541_v9, %v1507_v0  ;;  %2019 = vmatpush.msra.mxu0 %v1891_v1  ;;  %1976 = vmatpush.msrb.mxu3 %v1840_v57 }
 0x286   : > { %v1585_v17 = vsub.f32 %v1583_v59, %v1584_v3  ;;  %v1427_v49 = vpop.f32.mrf.mxu2  ;;  %1720 = vmatmul.f32.vlgmr.msra.gmra.mxu1 %v1584_v3  ;;  %v1475_v52 = vpop.f32.mrf.mxu3 }
 0x287   : > { %v1556_v30 = vsel %vm239_vm0, %v1542_v14, 0  ;;  %v1428_v20 = vadd.f32 %v1427_v49, %v1388_v60  ;;  %2023 = vmatpush.msra.mxu0 %v1897_v61  ;;  %2056 = vmatpush.msra.mxu1 %v1838_v40 }
 0x288   : > { %v1586_v28 = vand.u32 4294901760, %v1585_v17  ;;  %v3080_v38 = vand.u32 4294901760, %v1556_v30 }
 0x289   : > { %v1470_v10 = vadd.f32 %v1469_v8, %v1428_v20  ;;  %2058 = vmatpush.msra.mxu1 %v1840_v57 }
 0x28a   : > { %v1591_v62 = vsub.f32 %v1556_v30, %v3080_v38  ;;  %1587 = vmatmul.f32.vlgmr.msrb.gmra.mxu2 %v1586_v28  ;;  %1646 = vmatmul.f32.gmra.mxu3 %v3080_v38 }
 0x28b   : > { %v1511_v19 = vadd.f32 %v1510_v25, %v1470_v10  ;;  %1934 = vmatpush.msrb.mxu2 %v1890_v21 }
 0x28c   : > { %1685 = vmatmul.f32.gmra.mxu0 %v1591_v62  ;;  %v1592_v2 = vand.u32 4294901760, %v1591_v62 }
 0x28d   : > { %v1546_v51 = vadd.f32 %v1545_v6, %v1511_v19  ;;  %1937 = vmatpush.msrb.mxu2 %v1896_v11 }
 0x28e   : > { %v1432_v34 = vpop.f32.mrf.mxu2  ;;  %1726 = vmatmul.f32.gmra.mxu1 %v1592_v2  ;;  %v1593_v9 = vsub.f32 %v1591_v62, %v1592_v2 }
 0x28f   : > { %v1559_v55 = vsel %vm239_vm0, %v1546_v51, 0  ;;  %v1433_v56 = vadd.f32 %v1432_v34, %v1392_v63 }
 0x290   : > { %v1598_v1 = vand.u32 4294901760, %v1559_v55  ;;  %v1594_v58 = vand.u32 4294901760, %v1593_v9 }
 0x291   : > { %v1476_v21 = vadd.f32 %v1475_v52, %v1433_v56 }
 0x292   : > { %v1599_v59 = vsub.f32 %v1559_v55, %v1598_v1  ;;  %1595 = vmatmul.f32.gmra.mxu2 %v1594_v58  ;;  %1650 = vmatmul.f32.gmra.mxu3 %v1598_v1 }
 0x293   : > { %v1515_v15 = vadd.f32 %v1514_v27, %v1476_v21 }
 0x294   : > { %1690 = vmatmul.f32.gmra.mxu0 %v1599_v59  ;;  %v1600_v4 = vand.u32 4294901760, %v1599_v59 }
 0x295   : > { %v1550_v0 = vadd.f32 %v1549_v5, %v1515_v15 }
 0x296   : > { %1732 = vmatmul.f32.gmra.mxu1 %v1600_v4  ;;  %v1601_v44 = vsub.f32 %v1599_v59, %v1600_v4 }
 0x297   : > { %v1562_v3 = vsel %vm239_vm0, %v1550_v0, 0 }
 0x298   : > { %v1606_v8 = vand.u32 4294901760, %v1562_v3  ;;  %v1602_v60 = vand.u32 4294901760, %v1601_v44 }
 0x29a   : > { %v1607_v40 = vsub.f32 %v1562_v3, %v1606_v8  ;;  %1603 = vmatmul.f32.gmra.mxu2 %v1602_v60  ;;  %1654 = vmatmul.f32.gmra.mxu3 %v1606_v8 }
 0x29c   : > { %1695 = vmatmul.f32.gmra.mxu0 %v1607_v40  ;;  %v1608_v14 = vand.u32 4294901760, %v1607_v40 }
 0x29e   : > { %1738 = vmatmul.f32.gmra.mxu1 %v1608_v14  ;;  %v1609_v57 = vsub.f32 %v1607_v40, %v1608_v14 }
 0x2a0   : > { %v1610_v11 = vand.u32 4294901760, %v1609_v57 }
 0x2a2   : > { %1611 = vmatmul.f32.gmra.mxu2 %v1610_v11  ;;  %1800 = vmatmul.f32.vlgmr.msra.gmra.mxu3 %v3074_v24 }
 0x2a3   : > { %2158 = vmatpush.msra.mxu3 %v2897_v45 }
 0x2a4   : > { %1847 = vmatmul.f32.vlgmr.msrb.gmra.mxu0 %v2827_v26 }
 0x2a5   : > { %2164 = vmatpush.msra.mxu3 %v2918_v53  ;;  %2198 = vmatpush.msrb.mxu0 %v2888_v42 }
 0x2a6   : > { %1902 = vmatmul.f32.vlgmr.msrb.gmra.mxu1 %v2800_v7 }
 0x2a7   : > { %2201 = vmatpush.msrb.mxu0 %v2907_v48  ;;  %2238 = vmatpush.msrb.mxu1 %v2884_v41 }
 0x2a9   : > { %2240 = vmatpush.msrb.mxu1 %v2903_v47 }
 0x2aa   : > { %1765 = vmatmul.f32.vlgmr.msra.gmra.mxu2 %v3074_v24  ;;  %1804 = vmatmul.f32.gmra.mxu3 %v3080_v38 }
 0x2ab   : > { %2103 = vmatpush.msra.mxu2 %v2884_v41 }
 0x2ac   : > { %1855 = vmatmul.f32.gmra.mxu0 %v2841_v31 }
 0x2ad   : > { %2105 = vmatpush.msra.mxu2 %v2903_v47 }
 0x2ae   : > { %1906 = vmatmul.f32.gmra.mxu1 %v2806_v12 }
 0x2b2   : > { %1769 = vmatmul.f32.gmra.mxu2 %v3080_v38  ;;  %1808 = vmatmul.f32.gmra.mxu3 %v1598_v1 }
 0x2b4   : > { %1863 = vmatmul.f32.gmra.mxu0 %v2857_v36 }
 0x2b6   : > { %1910 = vmatmul.f32.gmra.mxu1 %v2825_v23 }
 0x2ba   : > { %1773 = vmatmul.f32.gmra.mxu2 %v1598_v1  ;;  %1812 = vmatmul.f32.gmra.mxu3 %v1606_v8 }
 0x2bc   : > { %1871 = vmatmul.f32.gmra.mxu0 %v2868_v39 }
 0x2be   : > { %1914 = vmatmul.f32.gmra.mxu1 %v2847_v33 }
 0x2c2   : > { %1777 = vmatmul.f32.gmra.mxu2 %v1606_v8  ;;  %1980 = vmatmul.f32.vlgmr.msrb.gmra.mxu3 %v2816_v18 }
 0x2c3   : > { %2320 = vmatpush.msrb.mxu3 %v2884_v41 }
 0x2c4   : > { %2025 = vmatmul.f32.vlgmr.msra.gmra.mxu0 %v2800_v7 }
 0x2c5   : > { %2322 = vmatpush.msrb.mxu3 %v2903_v47 }
 0x2c6   : > { %2060 = vmatmul.f32.vlgmr.msra.gmra.mxu1 %v2800_v7 }
 0x2ca   : > { %1940 = vmatmul.f32.vlgmr.msrb.gmra.mxu2 %v2809_v13  ;;  %1986 = vmatmul.f32.gmra.mxu3 %v2823_v22 }
 0x2cb   : > { %2283 = vmatpush.msrb.mxu2 %v2892_v43 }
 0x2cc   : > { %2029 = vmatmul.f32.gmra.mxu0 %v2806_v12 }
 0x2cd   : > { %2287 = vmatpush.msrb.mxu2 %v2912_v50 }
 0x2ce   : > { %2064 = vmatmul.f32.gmra.mxu1 %v2806_v12 }
 0x2d2   : > { %1945 = vmatmul.f32.gmra.mxu2 %v2812_v16  ;;  %1992 = vmatmul.f32.gmra.mxu3 %v2845_v32 }
 0x2d4   : > { %2033 = vmatmul.f32.gmra.mxu0 %v2825_v23 }
 0x2d6   : > { %2068 = vmatmul.f32.gmra.mxu1 %v2825_v23 }
 0x2da   : > { %1950 = vmatmul.f32.gmra.mxu2 %v2836_v29  ;;  %1998 = vmatmul.f32.gmra.mxu3 %v2861_v37 }
 0x2dc   : > { %2037 = vmatmul.f32.gmra.mxu0 %v2847_v33 }
 0x2de   : > { %2072 = vmatmul.f32.gmra.mxu1 %v2847_v33 }
 0x2e2   : > { %1955 = vmatmul.f32.gmra.mxu2 %v2853_v35 }
 0x301   : > { %v1681_v7 = vpop.f32.mrf.mxu0 }
 0x303   : > { %v1721_v12 = vpop.f32.mrf.mxu1 }
 0x305   : > { %v1643_v13 = vpop.f32.mrf.mxu3 }
 0x309   : > { %v1686_v16 = vpop.f32.mrf.mxu0 }
 0x30b   : > { %v1727_v18 = vpop.f32.mrf.mxu1 }
 0x30d   : > { %v1588_v22 = vpop.f32.mrf.mxu2  ;;  %v1647_v26 = vpop.f32.mrf.mxu3 }
 0x30e   : > { %v1644_v33 = vadd.f32 %v1643_v13, %v1588_v22 }
 0x310   : > { %v1682_v47 = vadd.f32 %v1681_v7, %v1644_v33 }
 0x311   : > { %v1691_v31 = vpop.f32.mrf.mxu0 }
 0x312   : > { %v1722_v53 = vadd.f32 %v1721_v12, %v1682_v47 }
 0x313   : > { %v1733_v32 = vpop.f32.mrf.mxu1 }
 0x315   : > { %v1596_v23 = vpop.f32.mrf.mxu2  ;;  %v1651_v36 = vpop.f32.mrf.mxu3 }
 0x316   : > { %v1648_v50 = vadd.f32 %v1647_v26, %v1596_v23 }
 0x318   : > { %v1687_v30 = vadd.f32 %v1686_v16, %v1648_v50 }
 0x319   : > { %v1696_v29 = vpop.f32.mrf.mxu0 }
 0x31a   : > { %v1728_v28 = vadd.f32 %v1727_v18, %v1687_v30 }
 0x31b   : > { %v1739_v39 = vpop.f32.mrf.mxu1 }
 0x31d   : > { %v1604_v37 = vpop.f32.mrf.mxu2  ;;  %v1655_v41 = vpop.f32.mrf.mxu3 }
 0x31e   : > { %v1652_v61 = vadd.f32 %v1651_v36, %v1604_v37 }
 0x320   : > { %v1692_v62 = vadd.f32 %v1691_v31, %v1652_v61 }
 0x321   : > { %v1848_v42 = vpop.f32.mrf.mxu0 }
 0x322   : > { %v1734_v63 = vadd.f32 %v1733_v32, %v1692_v62 }
 0x323   : > { %v1903_v43 = vpop.f32.mrf.mxu1 }
 0x324   : > { %v1904_v0 = vadd.f32 %v1903_v43, %v1848_v42 }
 0x325   : > { %v1612_v35 = vpop.f32.mrf.mxu2  ;;  %v1801_v45 = vpop.f32.mrf.mxu3 }
 0x326   : > { %v1656_v2 = vadd.f32 %v1655_v41, %v1612_v35 }
 0x328   : > { %v1697_v55 = vadd.f32 %v1696_v29, %v1656_v2 }
 0x329   : > { %v1856_v48 = vpop.f32.mrf.mxu0 }
 0x32a   : > { %v1740_v27 = vadd.f32 %v1739_v39, %v1697_v55 }
 0x32b   : > { %v1907_v25 = vpop.f32.mrf.mxu1 }
 0x32c   : > { %v1908_v57 = vadd.f32 %v1907_v25, %v1856_v48 }
 0x32d   : > { %v1766_v24 = vpop.f32.mrf.mxu2  ;;  %v1805_v17 = vpop.f32.mrf.mxu3 }
 0x32e   : > { %v1767_v49 = vadd.f32 %v1766_v24, %v1722_v53 }
 0x330   : > { %v1802_v20 = vadd.f32 %v1801_v45, %v1767_v49 }
 0x331   : > { %v1864_v38 = vpop.f32.mrf.mxu0 }
 0x332   : > { %2483 = vst.msk [vmem:[%s2984_s21 + $0x40] sm:$0xff] %vm768_vm1, %v1802_v20 }
 0x333   : > { %v1911_v46 = vpop.f32.mrf.mxu1 }
 0x334   : > { %v1912_v36 = vadd.f32 %v1911_v46, %v1864_v38 }
 0x335   : > { %v1770_v6 = vpop.f32.mrf.mxu2  ;;  %v1809_v10 = vpop.f32.mrf.mxu3 }
 0x336   : > { %v1771_v54 = vadd.f32 %v1770_v6, %v1728_v28 }
 0x338   : > { %v1806_v19 = vadd.f32 %v1805_v17, %v1771_v54 }
 0x339   : > { %v1872_v9 = vpop.f32.mrf.mxu0 }
 0x33a   : > { %2484 = vst.msk [vmem:[%s2984_s21 + $0x48] sm:$0xff] %vm768_vm1, %v1806_v19 }
 0x33b   : > { %v1915_v1 = vpop.f32.mrf.mxu1 }
 0x33c   : > { %v1916_v24 = vadd.f32 %v1915_v1, %v1872_v9 }
 0x33d   : > { %v1774_v51 = vpop.f32.mrf.mxu2  ;;  %v1813_v52 = vpop.f32.mrf.mxu3 }
 0x33e   : > { %v1775_v34 = vadd.f32 %v1774_v51, %v1734_v63 }
 0x340   : > { %v1810_v56 = vadd.f32 %v1809_v10, %v1775_v34 }
 0x341   : > { %v2026_v15 = vpop.f32.mrf.mxu0 }
 0x342   : > { %2485 = vst.msk [vmem:[%s2984_s21 + $0x50] sm:$0xff] %vm768_vm1, %v1810_v56 }
 0x343   : > { %v2061_v4 = vpop.f32.mrf.mxu1 }
 0x345   : > { %v1778_v58 = vpop.f32.mrf.mxu2  ;;  %v1981_v59 = vpop.f32.mrf.mxu3 }
 0x346   : > { %v1779_v21 = vadd.f32 %v1778_v58, %v1740_v27 }
 0x348   : > { %v1814_v5 = vadd.f32 %v1813_v52, %v1779_v21 }
 0x349   : > { %v2030_v14 = vpop.f32.mrf.mxu0 }
 0x34a   : > { %2486 = vst.msk [vmem:[%s2984_s21 + $0x58] sm:$0xff] %vm768_vm1, %v1814_v5 }
 0x34b   : > { %v2065_v12 = vpop.f32.mrf.mxu1 }
 0x34d   : > { %v1941_v44 = vpop.f32.mrf.mxu2  ;;  %v1987_v60 = vpop.f32.mrf.mxu3 }
 0x34e   : > { %v1942_v3 = vadd.f32 %v1941_v44, %v1904_v0 }
 0x350   : > { %v1982_v8 = vadd.f32 %v1981_v59, %v1942_v3 }
 0x351   : > { %v2034_v41 = vpop.f32.mrf.mxu0 }
 0x352   : > { %v2027_v40 = vadd.f32 %v2026_v15, %v1982_v8 }
 0x353   : > { %v2069_v45 = vpop.f32.mrf.mxu1 }
 0x354   : > { %v2062_v11 = vadd.f32 %v2061_v4, %v2027_v40 }
 0x355   : > { %v1946_v7 = vpop.f32.mrf.mxu2  ;;  %v1993_v23 = vpop.f32.mrf.mxu3 }
 0x356   : > { %v2077_v13 = vsel %vm239_vm0, %v2062_v11, 0  ;;  %v1947_v16 = vadd.f32 %v1946_v7, %v1908_v57 }
 0x357   : > { %v2106_v18 = vand.u32 4294901760, %v2077_v13 }
 0x358   : > { %v1988_v22 = vadd.f32 %v1987_v60, %v1947_v16 }
 0x359   : > { %v2107_v26 = vsub.f32 %v2077_v13, %v2106_v18  ;;  %2166 = vmatmul.f32.vlgmr.msra.gmra.mxu3 %v2106_v18  ;;  %v2038_v38 = vpop.f32.mrf.mxu0 }
 0x35a   : > { %v2031_v31 = vadd.f32 %v2030_v14, %v1988_v22 }
 0x35b   : > { %v2108_v32 = vand.u32 4294901760, %v2107_v26  ;;  %2204 = vmatmul.f32.vlgmr.msrb.gmra.mxu0 %v2107_v26  ;;  %v2073_v62 = vpop.f32.mrf.mxu1 }
 0x35c   : > { %v2066_v29 = vadd.f32 %v2065_v12, %v2031_v31 }
 0x35d   : > { %v2109_v39 = vsub.f32 %v2107_v26, %v2108_v32  ;;  %v1951_v37 = vpop.f32.mrf.mxu2  ;;  %2244 = vmatmul.f32.vlgmr.msrb.gmra.mxu1 %v2108_v32  ;;  %v1999_v25 = vpop.f32.mrf.mxu3 }
 0x35e   : > { %v2080_v42 = vsel %vm239_vm0, %v2066_v29, 0  ;;  %v1952_v33 = vadd.f32 %v1951_v37, %v1912_v36 }
 0x35f   : > { %v2110_v43 = vand.u32 4294901760, %v2109_v39  ;;  %v2114_v35 = vand.u32 4294901760, %v2080_v42 }
 0x360   : > { %v1994_v47 = vadd.f32 %v1993_v23, %v1952_v33 }
 0x361   : > { %v2115_v48 = vsub.f32 %v2080_v42, %v2114_v35  ;;  %2111 = vmatmul.f32.vlgmr.msra.gmra.mxu2 %v2110_v43  ;;  %2170 = vmatmul.f32.gmra.mxu3 %v2114_v35 }
 0x362   : > { %v2035_v50 = vadd.f32 %v2034_v41, %v1994_v47 }
 0x363   : > { %2209 = vmatmul.f32.gmra.mxu0 %v2115_v48  ;;  %v2116_v53 = vand.u32 4294901760, %v2115_v48 }
 0x364   : > { %v2070_v17 = vadd.f32 %v2069_v45, %v2035_v50 }
 0x365   : > { %v1956_v49 = vpop.f32.mrf.mxu2  ;;  %2250 = vmatmul.f32.gmra.mxu1 %v2116_v53  ;;  %v2117_v30 = vsub.f32 %v2115_v48, %v2116_v53 }
 0x366   : > { %v2083_v20 = vsel %vm239_vm0, %v2070_v17, 0  ;;  %v1957_v61 = vadd.f32 %v1956_v49, %v1916_v24 }
 0x367   : > { %v2122_v28 = vand.u32 4294901760, %v2083_v20  ;;  %v2118_v6 = vand.u32 4294901760, %v2117_v30 }
 0x368   : > { %v2000_v10 = vadd.f32 %v1999_v25, %v1957_v61 }
 0x369   : > { %v2123_v54 = vsub.f32 %v2083_v20, %v2122_v28  ;;  %2119 = vmatmul.f32.gmra.mxu2 %v2118_v6  ;;  %2174 = vmatmul.f32.gmra.mxu3 %v2122_v28 }
 0x36a   : > { %v2039_v19 = vadd.f32 %v2038_v38, %v2000_v10 }
 0x36b   : > { %2214 = vmatmul.f32.gmra.mxu0 %v2123_v54  ;;  %v2124_v46 = vand.u32 4294901760, %v2123_v54 }
 0x36c   : > { %v2074_v2 = vadd.f32 %v2073_v62, %v2039_v19 }
 0x36d   : > { %2256 = vmatmul.f32.gmra.mxu1 %v2124_v46  ;;  %v2125_v63 = vsub.f32 %v2123_v54, %v2124_v46 }
 0x36e   : > { %v2086_v51 = vsel %vm239_vm0, %v2074_v2, 0 }
 0x36f   : > { %v2130_v34 = vand.u32 4294901760, %v2086_v51  ;;  %v2126_v52 = vand.u32 4294901760, %v2125_v63 }
 0x371   : > { %v2131_v9 = vsub.f32 %v2086_v51, %v2130_v34  ;;  %2127 = vmatmul.f32.gmra.mxu2 %v2126_v52  ;;  %2178 = vmatmul.f32.gmra.mxu3 %v2130_v34 }
 0x373   : > { %2219 = vmatmul.f32.gmra.mxu0 %v2131_v9  ;;  %v2132_v55 = vand.u32 4294901760, %v2131_v9 }
 0x375   : > { %2262 = vmatmul.f32.gmra.mxu1 %v2132_v55  ;;  %v2133_v56 = vsub.f32 %v2131_v9, %v2132_v55 }
 0x377   : > { %v2134_v1 = vand.u32 4294901760, %v2133_v56 }
 0x379   : > { %2135 = vmatmul.f32.gmra.mxu2 %v2134_v1  ;;  %2324 = vmatmul.f32.vlgmr.msrb.gmra.mxu3 %v2106_v18 }
 0x381   : > { %2289 = vmatmul.f32.vlgmr.msrb.gmra.mxu2 %v2106_v18  ;;  %2328 = vmatmul.f32.gmra.mxu3 %v2114_v35 }
 0x389   : > { %2293 = vmatmul.f32.gmra.mxu2 %v2114_v35  ;;  %2332 = vmatmul.f32.gmra.mxu3 %v2122_v28 }
 0x391   : > { %2297 = vmatmul.f32.gmra.mxu2 %v2122_v28  ;;  %2336 = vmatmul.f32.gmra.mxu3 %v2130_v34 }
 0x399   : > { %2301 = vmatmul.f32.gmra.mxu2 %v2130_v34 }
 0x3d8   : > { %v2205_v0 = vpop.f32.mrf.mxu0 }
 0x3da   : > { %v2245_v3 = vpop.f32.mrf.mxu1 }
 0x3dc   : > { %v2167_v27 = vpop.f32.mrf.mxu3 }
 0x3e0   : > { %v2210_v14 = vpop.f32.mrf.mxu0 }
 0x3e2   : > { %v2251_v13 = vpop.f32.mrf.mxu1 }
 0x3e4   : > { %v2112_v58 = vpop.f32.mrf.mxu2  ;;  %v2171_v21 = vpop.f32.mrf.mxu3 }
 0x3e5   : > { %v2168_v44 = vadd.f32 %v2167_v27, %v2112_v58 }
 0x3e7   : > { %v2206_v60 = vadd.f32 %v2205_v0, %v2168_v44 }
 0x3e8   : > { %v2215_v32 = vpop.f32.mrf.mxu0 }
 0x3e9   : > { %v2246_v11 = vadd.f32 %v2245_v3, %v2206_v60 }
 0x3ea   : > { %v2257_v37 = vpop.f32.mrf.mxu1 }
 0x3ec   : > { %v2120_v59 = vpop.f32.mrf.mxu2  ;;  %v2175_v5 = vpop.f32.mrf.mxu3 }
 0x3ed   : > { %v2172_v57 = vadd.f32 %v2171_v21, %v2120_v59 }
 0x3ef   : > { %v2211_v16 = vadd.f32 %v2210_v14, %v2172_v57 }
 0x3f0   : > { %v2220_v45 = vpop.f32.mrf.mxu0 }
 0x3f1   : > { %v2252_v31 = vadd.f32 %v2251_v13, %v2211_v16 }
 0x3f2   : > { %v2263_v50 = vpop.f32.mrf.mxu1 }
 0x3f4   : > { %v2128_v15 = vpop.f32.mrf.mxu2  ;;  %v2179_v4 = vpop.f32.mrf.mxu3 }
 0x3f5   : > { %v2176_v26 = vadd.f32 %v2175_v5, %v2128_v15 }
 0x3f7   : > { %v2216_v29 = vadd.f32 %v2215_v32, %v2176_v26 }
 0x3f9   : > { %v2258_v42 = vadd.f32 %v2257_v37, %v2216_v29 }
 0x3fc   : > { %v2136_v8 = vpop.f32.mrf.mxu2  ;;  %v2325_v40 = vpop.f32.mrf.mxu3 }
 0x3fd   : > { %v2180_v41 = vadd.f32 %v2179_v4, %v2136_v8 }
 0x3ff   : > { %v2221_v47 = vadd.f32 %v2220_v45, %v2180_v41 }
 0x401   : > { %v2264_v53 = vadd.f32 %v2263_v50, %v2221_v47 }
 0x404   : > { %v2290_v7 = vpop.f32.mrf.mxu2  ;;  %v2329_v22 = vpop.f32.mrf.mxu3 }
 0x405   : > { %v2291_v12 = vadd.f32 %v2290_v7, %v2246_v11 }
 0x407   : > { %v2326_v18 = vadd.f32 %v2325_v40, %v2291_v12 }
 0x409   : > { %2489 = vst.msk [vmem:[%s2984_s21 + $0x60] sm:$0xff] %vm768_vm1, %v2326_v18 }
 0x40c   : > { %v2294_v23 = vpop.f32.mrf.mxu2  ;;  %v2333_v33 = vpop.f32.mrf.mxu3 }
 0x40d   : > { %v2295_v36 = vadd.f32 %v2294_v23, %v2252_v31 }
 0x40f   : > { %v2330_v39 = vadd.f32 %v2329_v22, %v2295_v36 }
 0x411   : > { %2490 = vst.msk [vmem:[%s2984_s21 + $0x68] sm:$0xff] %vm768_vm1, %v2330_v39 }
 0x414   : > { %v2298_v43 = vpop.f32.mrf.mxu2  ;;  %v2337_v49 = vpop.f32.mrf.mxu3 }
 0x415   : > { %v2299_v35 = vadd.f32 %v2298_v43, %v2258_v42 }
 0x417   : > { %v2334_v48 = vadd.f32 %v2333_v33, %v2299_v35 }
 0x419   : > { %2491 = vst.msk [vmem:[%s2984_s21 + $0x70] sm:$0xff] %vm768_vm1, %v2334_v48 }
 0x41c   : > { %v2302_v24 = vpop.f32.mrf.mxu2 }
 0x41d   : > { %v2303_v17 = vadd.f32 %v2302_v24, %v2264_v53 }
 0x41f   : > { %v2338_v25 = vadd.f32 %v2337_v49, %v2303_v17 }
 0x421   : > { %2492 = vst.msk [vmem:[%s2984_s21 + $0x78] sm:$0xff] %vm768_vm1, %v2338_v25 }
 0x422   : > { %2626 = shalt.err (!%p2623_p13)
}
 0x423   : > { %s2685_s19 = smov 128   ;;  %s2686_s11 = smov 8  }
 0x424   : > { %2505 = dma.vmem_to_hbm [thread:$0]  (%p2758_p9), %s2362_s30, 2048, %s2364_s4, %s2346_s15, %s2685_s19, %s2685_s19, %s2686_s11  }
 0x425 PF: > { %s2378_s18 = sand.u32 1, %s2661_s12   ;;  %p2512_p0 = pnand %p2467_p12, %p2765_p11 }
 0x426   : > { %s2379_s21 = scalar_lea.sflag [#allocation4], %s2378_s18 }
 0x427   : > { %p2513_p1 = pneg %p2512_p0 }
 0x429   : > { %2656 = dma.done.wait (%p2513_p1), %s2379_s21, 2048  }
 0x42a   : > { %2658 = vsyncadd (%p2513_p1), %s2379_s21, 4294965248  ;;  %s19_s17 = sadd.s32 1, %s2681_s17   ;;  %s3195_s12 = smov %s2665_s13 }
 0x42b   : > { %p16_p2 = scmp.ge.s32.totalorder %s19_s17, 4   ;;  %s3196_s13 = smov %s2669_s14 }
 0x42c   : > { %s3197_s14 = smov %s2763_s26  ;;  %s3198_s15 = smov %s2677_s16 }
 0x42d   : > { %s3199_s16 = smov %s3201_s20  ;;  %18 = sbr.rel (!%p16_p2) target bundleno = 6 (0x6), region = 86 }
 0x432   :  { %2385 = vsyncpa [#allocation3], 1 }
 0x433   :  { %2387 = vsyncpa [#allocation3 + $0x1], 1 }
 0x434   :  { %2388 = vsyncpa [#allocation4], 1 }
 0x435   :  { %2390 = vsyncpa [#allocation4 + $0x1], 1 }

</bundles_post_ra>
